<compile_context>
chip_gen: v7x
topology: tpu7x:2x2x1
jax: 0.10.0
libtpu: 0.0.40
codegen_flags: <defaults>
</compile_context>

<pallas_src>
import functools
import math

import jax
import jax.numpy as jnp
from jax.experimental import pallas as pl
from jax.experimental.pallas import tpu as pltpu

# ---------------- model config (small, BERT-like) ----------------
HIDDEN = 128
NUM_HEADS = 4
HEAD_DIM = HIDDEN // NUM_HEADS
INTERMEDIATE = 256
NUM_LAYERS = 2
MAX_POS = 16
TYPE_VOCAB = 2
LN_EPS = 1e-12
CLASS_PAD = 128            # classifier output padded to a lane-dense width


# ---------------- fused kernel ----------------
def _ln(x, g, b, eps):
    mu = jnp.mean(x, axis=-1, keepdims=True)
    var = jnp.mean(jnp.square(x - mu), axis=-1, keepdims=True)
    return (x - mu) * jax.lax.rsqrt(var + eps) * g + b


def _bert_fused_kernel(emb_ref, bias_ref,
                       wqkv_ref, bqkv_ref, wo_ref, bo_ref, ln1g_ref, ln1b_ref,
                       w1_ref, b1_ref, w2_ref, b2_ref, ln2g_ref, ln2b_ref,
                       embg_ref, embb_ref, poolw_ref, poolb_ref, fcw_ref, fcb_ref,
                       out_ref, h_scratch,
                       *, num_heads, head_dim, eps, apply_softmax):
    """One grid step = (one batch element, one encoder layer).

    The hidden state lives in `h_scratch` (VMEM) across the layer axis, so the
    activations never round-trip to HBM between layers.  Layer 0 additionally
    applies the embedding LayerNorm; the last layer additionally runs the
    pooler + classifier head on the [CLS] row.
    """
    layer = pl.program_id(1)
    n_layers = pl.num_programs(1)
    H = num_heads * head_dim
    scale = 1.0 / math.sqrt(head_dim)

    # ---- embedding LayerNorm (only at layer 0) ----
    @pl.when(layer == 0)
    def _():
        h_scratch[...] = _ln(emb_ref[0], embg_ref[...], embb_ref[...], eps)

    h = h_scratch[...]                          # (S, H) f32
    bias = bias_ref[0]                          # (1, S) additive key mask

    # ---- self-attention with fused Q/K/V projection ----
    qkv = jnp.dot(h.astype(jnp.bfloat16), wqkv_ref[0],
                  preferred_element_type=jnp.float32) + bqkv_ref[0]   # (S, 3H)
    heads = []
    for hd in range(num_heads):                 # static unroll; lane slices are free views
        q = qkv[:, hd * head_dim:(hd + 1) * head_dim].astype(jnp.bfloat16)
        k = qkv[:, H + hd * head_dim:H + (hd + 1) * head_dim].astype(jnp.bfloat16)
        v = qkv[:, 2 * H + hd * head_dim:2 * H + (hd + 1) * head_dim].astype(jnp.bfloat16)
        # q @ k^T without materializing a transpose: contract last dims of both.
        s = jax.lax.dot_general(q, k, (((1,), (1,)), ((), ())),
                                preferred_element_type=jnp.float32)
        s = s * scale + bias
        m = jnp.max(s, axis=-1, keepdims=True)
        p = jnp.exp(s - m)
        p = p * pl.reciprocal(jnp.sum(p, axis=-1, keepdims=True), approx=True)
        heads.append(jnp.dot(p.astype(jnp.bfloat16), v,
                             preferred_element_type=jnp.float32))
    ctx = jnp.concatenate(heads, axis=-1)                             # (S, H) lane-dense
    attn = jnp.dot(ctx.astype(jnp.bfloat16), wo_ref[0],
                   preferred_element_type=jnp.float32) + bo_ref[0]
    h1 = _ln(attn + h, ln1g_ref[0], ln1b_ref[0], eps)

    # ---- FFN + residual + LayerNorm ----
    y = jnp.dot(h1.astype(jnp.bfloat16), w1_ref[0],
                preferred_element_type=jnp.float32) + b1_ref[0]
    y = jax.nn.gelu(y, approximate=True)        # tanh lands on the EUP slot
    y = jnp.dot(y.astype(jnp.bfloat16), w2_ref[0],
                preferred_element_type=jnp.float32) + b2_ref[0]
    h2 = _ln(y + h1, ln2g_ref[0], ln2b_ref[0], eps)
    h_scratch[...] = h2

    # ---- pooler + dropout(identity) + classifier (+softmax) at the last layer ----
    # TODO(synk): nn.Dropout is identity at inference; stochastic masking would need pltpu.prng_*.
    @pl.when(layer == n_layers - 1)
    def _():
        cls = h2[0:1, :]                                              # [CLS] row, (1, H)
        pooled = jnp.tanh(jnp.dot(cls.astype(jnp.bfloat16), poolw_ref[...],
                                  preferred_element_type=jnp.float32) + poolb_ref[...])
        logits = jnp.dot(pooled.astype(jnp.bfloat16), fcw_ref[...],
                         preferred_element_type=jnp.float32) + fcb_ref[...]
        if apply_softmax:
            # Padded columns carry a -1e30 bias -> exp underflows to 0, so the
            # softmax over the padded 128-wide slab equals the unpadded softmax.
            m = jnp.max(logits, axis=-1, keepdims=True)
            e = jnp.exp(logits - m)
            logits = e * pl.reciprocal(jnp.sum(e, axis=-1, keepdims=True), approx=True)
        out_ref[0] = logits


# ---------------- pallas_call wrapper ----------------
def bert_fused(emb, attn_bias, layers, emb_ln_g, emb_ln_b,
               pool_w, pool_b, fc_w_pad, fc_b_pad, apply_softmax):
    B, S, H = emb.shape
    L = layers["wqkv"].shape[0]
    I = layers["w1"].shape[2]
    N = fc_w_pad.shape[1]

    def const(blk):
        return pl.BlockSpec(blk, lambda b, l, _n=len(blk): (0,) * _n)

    def per_layer(blk):
        return pl.BlockSpec(blk, lambda b, l, _n=len(blk): (l,) + (0,) * (_n - 1))

    def per_batch(blk):
        return pl.BlockSpec(blk, lambda b, l, _n=len(blk): (b,) + (0,) * (_n - 1))

    out = pl.pallas_call(
        functools.partial(_bert_fused_kernel, num_heads=NUM_HEADS,
                          head_dim=HEAD_DIM, eps=LN_EPS,
                          apply_softmax=apply_softmax),
        out_shape=jax.ShapeDtypeStruct((B, 1, N), jnp.float32),
        grid=(B, L),
        in_specs=[
            per_batch((1, S, H)),            # embeddings (pre-LayerNorm)
            per_batch((1, 1, S)),            # additive attention mask
            per_layer((1, H, 3 * H)),        # wqkv
            per_layer((1, 1, 3 * H)),        # bqkv
            per_layer((1, H, H)),            # wo
            per_layer((1, 1, H)),            # bo
            per_layer((1, 1, H)),            # ln1 gamma
            per_layer((1, 1, H)),            # ln1 beta
            per_layer((1, H, I)),            # w1
            per_layer((1, 1, I)),            # b1
            per_layer((1, I, H)),            # w2
            per_layer((1, 1, H)),            # b2
            per_layer((1, 1, H)),            # ln2 gamma
            per_layer((1, 1, H)),            # ln2 beta
            const((1, H)),                   # embedding LN gamma
            const((1, H)),                   # embedding LN beta
            const((H, H)),                   # pooler weight
            const((1, H)),                   # pooler bias
            const((H, N)),                   # classifier weight (padded)
            const((1, N)),                   # classifier bias (padded, -1e30 on pads)
        ],
        out_specs=per_batch((1, 1, N)),
        scratch_shapes=[pltpu.VMEM((S, H), jnp.float32)],
        compiler_params=pltpu.CompilerParams(
            dimension_semantics=("parallel", "arbitrary")),
    )(emb, attn_bias,
      layers["wqkv"], layers["bqkv"], layers["wo"], layers["bo"],
      layers["ln1_g"], layers["ln1_b"],
      layers["w1"], layers["b1"], layers["w2"], layers["b2"],
      layers["ln2_g"], layers["ln2_b"],
      emb_ln_g, emb_ln_b, pool_w, pool_b, fc_w_pad, fc_b_pad)
    return out[:, 0, :]                      # (B, CLASS_PAD)


# ---------------- parameters ----------------
def init_params(key, vocab_size, num_classes):
    def nrm(k, shape, dtype=jnp.float32):
        return (0.02 * jax.random.normal(k, shape, dtype=jnp.float32)).astype(dtype)

    keys = iter(jax.random.split(key, 16))
    L = NUM_LAYERS

    fc_w = nrm(next(keys), (HIDDEN, num_classes))
    fc_w_pad = (jnp.zeros((HIDDEN, CLASS_PAD), jnp.float32)
                .at[:, :num_classes].set(fc_w)).astype(jnp.bfloat16)
    fc_b_pad = (jnp.full((CLASS_PAD,), -1e30, jnp.float32)
                .at[:num_classes].set(0.0)).reshape(1, CLASS_PAD)

    layers = {
        "wqkv": nrm(next(keys), (L, HIDDEN, 3 * HIDDEN), jnp.bfloat16),
        "bqkv": jnp.zeros((L, 1, 3 * HIDDEN), jnp.float32),
        "wo": nrm(next(keys), (L, HIDDEN, HIDDEN), jnp.bfloat16),
        "bo": jnp.zeros((L, 1, HIDDEN), jnp.float32),
        "ln1_g": jnp.ones((L, 1, HIDDEN), jnp.float32),
        "ln1_b": jnp.zeros((L, 1, HIDDEN), jnp.float32),
        "w1": nrm(next(keys), (L, HIDDEN, INTERMEDIATE), jnp.bfloat16),
        "b1": jnp.zeros((L, 1, INTERMEDIATE), jnp.float32),
        "w2": nrm(next(keys), (L, INTERMEDIATE, HIDDEN), jnp.bfloat16),
        "b2": jnp.zeros((L, 1, HIDDEN), jnp.float32),
        "ln2_g": jnp.ones((L, 1, HIDDEN), jnp.float32),
        "ln2_b": jnp.zeros((L, 1, HIDDEN), jnp.float32),
    }
    return {
        "word_emb": nrm(next(keys), (vocab_size, HIDDEN)),
        "pos_emb": nrm(next(keys), (MAX_POS, HIDDEN)),
        "type_emb": nrm(next(keys), (TYPE_VOCAB, HIDDEN)),
        "emb_ln_g": jnp.ones((1, HIDDEN), jnp.float32),
        "emb_ln_b": jnp.zeros((1, HIDDEN), jnp.float32),
        "pool_w": nrm(next(keys), (HIDDEN, HIDDEN), jnp.bfloat16),
        "pool_b": jnp.zeros((1, HIDDEN), jnp.float32),
        "fc_w_pad": fc_w_pad,
        "fc_b_pad": fc_b_pad,
        "layers": layers,
    }


# ---------------- forward pass (mirrors BERTClassifier.forward) ----------------
def bert_classifier_forward(params, ids, mask, token_type_ids, num_classes,
                            apply_softmax=False):
    B, S = ids.shape

    # Embedding gathers + adds are plain-JAX glue (data-dependent gather);
    # everything downstream (LayerNorm, encoder, pooler, classifier) is one
    # fused Pallas kernel.
    word = jnp.take(params["word_emb"], ids, axis=0)            # (B, S, H)
    pos = params["pos_emb"][:S][None, :, :]                     # (1, S, H)
    tok = jnp.take(params["type_emb"], token_type_ids, axis=0)  # (B, S, H)
    emb = word + pos + tok                                      # (B, S, H)

    # additive attention mask: 0 where attended, -10000 where masked, (B, 1, S)
    attn_bias = (1.0 - mask.astype(jnp.float32))[:, None, :] * -10000.0

    logits = bert_fused(emb, attn_bias, params["layers"],
                        params["emb_ln_g"], params["emb_ln_b"],
                        params["pool_w"], params["pool_b"],
                        params["fc_w_pad"], params["fc_b_pad"],
                        apply_softmax)
    return logits[:, :num_classes]


if __name__ == "__main__":
    B, S = 2, 8
    VOCAB = 64
    NUM_CLASSES = 4

    key = jax.random.PRNGKey(0)
    k_ids, k_par = jax.random.split(key)
    ids = jax.random.randint(k_ids, (B, S), 0, VOCAB, dtype=jnp.int32)
    token_type_ids = jnp.zeros((B, S), dtype=jnp.int32)
    mask = jnp.ones((B, S), dtype=jnp.int32).at[:, S - 2:].set(0)  # last 2 tokens padded

    params = init_params(k_par, vocab_size=VOCAB, num_classes=NUM_CLASSES)

    out = bert_classifier_forward(params, ids, mask, token_type_ids,
                                  NUM_CLASSES, apply_softmax=True)
    out = jax.block_until_ready(out)

    assert out.shape == (B, NUM_CLASSES), out.shape
    assert bool(jnp.all(jnp.isfinite(out)))
    print("KERNEL_OK")
</pallas_src>

<mosaic_0001>
module attributes {stable_mosaic.version = 11 : i64} {
  func.func @_bert_fused_kernel(%arg0: i32, %arg1: i32, %arg2: memref<1x8x128xf32, #tpu.memory_space<vmem>>, %arg3: memref<1x1x8xf32, #tpu.memory_space<vmem>>, %arg4: memref<1x128x384xbf16, #tpu.memory_space<vmem>>, %arg5: memref<1x1x384xf32, #tpu.memory_space<vmem>>, %arg6: memref<1x128x128xbf16, #tpu.memory_space<vmem>>, %arg7: memref<1x1x128xf32, #tpu.memory_space<vmem>>, %arg8: memref<1x1x128xf32, #tpu.memory_space<vmem>>, %arg9: memref<1x1x128xf32, #tpu.memory_space<vmem>>, %arg10: memref<1x128x256xbf16, #tpu.memory_space<vmem>>, %arg11: memref<1x1x256xf32, #tpu.memory_space<vmem>>, %arg12: memref<1x256x128xbf16, #tpu.memory_space<vmem>>, %arg13: memref<1x1x128xf32, #tpu.memory_space<vmem>>, %arg14: memref<1x1x128xf32, #tpu.memory_space<vmem>>, %arg15: memref<1x1x128xf32, #tpu.memory_space<vmem>>, %arg16: memref<1x128xf32, #tpu.memory_space<vmem>>, %arg17: memref<1x128xf32, #tpu.memory_space<vmem>>, %arg18: memref<128x128xbf16, #tpu.memory_space<vmem>>, %arg19: memref<1x128xf32, #tpu.memory_space<vmem>>, %arg20: memref<128x128xbf16, #tpu.memory_space<vmem>>, %arg21: memref<1x128xf32, #tpu.memory_space<vmem>>, %arg22: memref<1x1x128xf32, #tpu.memory_space<vmem>>, %arg23: memref<8x128xf32, #tpu.memory_space<vmem>>) attributes {dimension_semantics = [#tpu.dimension_semantics<parallel>, #tpu.dimension_semantics<arbitrary>], iteration_bounds = array<i64: 2, 2>, scalar_prefetch = 0 : i64, scratch_operands = 1 : i64, tpu.core_type = #tpu.core_type<tc>, window_params = [{transform_indices = @transform_0, window_bounds = array<i64: 1, 8, 128>}, {transform_indices = @transform_1, window_bounds = array<i64: 1, 1, 8>}, {transform_indices = @transform_2, window_bounds = array<i64: 1, 128, 384>}, {transform_indices = @transform_3, window_bounds = array<i64: 1, 1, 384>}, {transform_indices = @transform_4, window_bounds = array<i64: 1, 128, 128>}, {transform_indices = @transform_5, window_bounds = array<i64: 1, 1, 128>}, {transform_indices = @transform_6, window_bounds = array<i64: 1, 1, 128>}, {transform_indices = @transform_7, window_bounds = array<i64: 1, 1, 128>}, {transform_indices = @transform_8, window_bounds = array<i64: 1, 128, 256>}, {transform_indices = @transform_9, window_bounds = array<i64: 1, 1, 256>}, {transform_indices = @transform_10, window_bounds = array<i64: 1, 256, 128>}, {transform_indices = @transform_11, window_bounds = array<i64: 1, 1, 128>}, {transform_indices = @transform_12, window_bounds = array<i64: 1, 1, 128>}, {transform_indices = @transform_13, window_bounds = array<i64: 1, 1, 128>}, {pipeline_mode = #tpu.pipeline_mode<synchronous>, transform_indices = @transform_14, window_bounds = array<i64: 1, 128>}, {pipeline_mode = #tpu.pipeline_mode<synchronous>, transform_indices = @transform_15, window_bounds = array<i64: 1, 128>}, {pipeline_mode = #tpu.pipeline_mode<synchronous>, transform_indices = @transform_16, window_bounds = array<i64: 128, 128>}, {pipeline_mode = #tpu.pipeline_mode<synchronous>, transform_indices = @transform_17, window_bounds = array<i64: 1, 128>}, {pipeline_mode = #tpu.pipeline_mode<synchronous>, transform_indices = @transform_18, window_bounds = array<i64: 128, 128>}, {pipeline_mode = #tpu.pipeline_mode<synchronous>, transform_indices = @transform_19, window_bounds = array<i64: 1, 128>}, {transform_indices = @transform_20, window_bounds = array<i64: 1, 1, 128>}]} {
    %c0_i32 = arith.constant 0 : i32
    %0 = arith.cmpi eq, %arg1, %c0_i32 : i32
    %1 = arith.extui %0 : i1 to i32
    %c0_i32_0 = arith.constant 0 : i32
    %2 = arith.cmpi ne, %1, %c0_i32_0 : i32
    scf.if %2 {
      %c0_81 = arith.constant 0 : index
      %c0_82 = arith.constant 0 : index
      %c0_83 = arith.constant 0 : index
      %202 = vector.load %arg2[%c0_81, %c0_82, %c0_83] : memref<1x8x128xf32, #tpu.memory_space<vmem>>, vector<1x8x128xf32>
      %203 = vector.shape_cast %202 : vector<1x8x128xf32> to vector<8x128xf32>
      %c0_84 = arith.constant 0 : index
      %c0_85 = arith.constant 0 : index
      %204 = vector.load %arg16[%c0_84, %c0_85] : memref<1x128xf32, #tpu.memory_space<vmem>>, vector<1x128xf32>
      %c0_86 = arith.constant 0 : index
      %c0_87 = arith.constant 0 : index
      %205 = vector.load %arg17[%c0_86, %c0_87] : memref<1x128xf32, #tpu.memory_space<vmem>>, vector<1x128xf32>
      %cst_88 = arith.constant dense<0.000000e+00> : vector<8xf32>
      %206 = vector.multi_reduction <add>, %203, %cst_88 [1] : vector<8x128xf32> to vector<8xf32>
      %207 = vector.shape_cast %206 : vector<8xf32> to vector<8x1xf32>
      %cst_89 = arith.constant 1.280000e+02 : f32
      %208 = vector.broadcast %cst_89 : f32 to vector<8x1xf32>
      %209 = arith.divf %207, %208 : vector<8x1xf32>
      %210 = vector.broadcast %209 : vector<8x1xf32> to vector<8x128xf32>
      %211 = arith.subf %203, %210 : vector<8x128xf32>
      %212 = arith.mulf %211, %211 : vector<8x128xf32>
      %cst_90 = arith.constant dense<0.000000e+00> : vector<8xf32>
      %213 = vector.multi_reduction <add>, %212, %cst_90 [1] : vector<8x128xf32> to vector<8xf32>
      %214 = vector.shape_cast %213 : vector<8xf32> to vector<8x1xf32>
      %cst_91 = arith.constant 1.280000e+02 : f32
      %215 = vector.broadcast %cst_91 : f32 to vector<8x1xf32>
      %216 = arith.divf %214, %215 : vector<8x1xf32>
      %217 = vector.broadcast %209 : vector<8x1xf32> to vector<8x128xf32>
      %218 = arith.subf %203, %217 : vector<8x128xf32>
      %cst_92 = arith.constant 9.99999996E-13 : f32
      %219 = vector.broadcast %cst_92 : f32 to vector<8x1xf32>
      %220 = arith.addf %216, %219 : vector<8x1xf32>
      %221 = math.rsqrt %220 : vector<8x1xf32>
      %222 = vector.broadcast %221 : vector<8x1xf32> to vector<8x128xf32>
      %223 = arith.mulf %218, %222 : vector<8x128xf32>
      %224 = vector.broadcast %204 : vector<1x128xf32> to vector<8x128xf32>
      %225 = arith.mulf %223, %224 : vector<8x128xf32>
      %226 = vector.broadcast %205 : vector<1x128xf32> to vector<8x128xf32>
      %227 = arith.addf %225, %226 : vector<8x128xf32>
      %c0_93 = arith.constant 0 : index
      %c0_94 = arith.constant 0 : index
      %228 = vector.load %arg23[%c0_93, %c0_94] : memref<8x128xf32, #tpu.memory_space<vmem>>, vector<8x128xf32>
      tpu.vector_store %arg23[%c0_93, %c0_94], %227 {strides = array<i32>} : memref<8x128xf32, #tpu.memory_space<vmem>>, vector<8x128xf32>,
    } else {
    }
    %c0 = arith.constant 0 : index
    %c0_1 = arith.constant 0 : index
    %3 = vector.load %arg23[%c0, %c0_1] : memref<8x128xf32, #tpu.memory_space<vmem>>, vector<8x128xf32>
    %c0_2 = arith.constant 0 : index
    %c0_3 = arith.constant 0 : index
    %c0_4 = arith.constant 0 : index
    %4 = vector.load %arg3[%c0_2, %c0_3, %c0_4] : memref<1x1x8xf32, #tpu.memory_space<vmem>>, vector<1x1x8xf32>
    %5 = vector.shape_cast %4 : vector<1x1x8xf32> to vector<1x8xf32>
    %6 = arith.truncf %3 : vector<8x128xf32> to vector<8x128xbf16>
    %c0_5 = arith.constant 0 : index
    %c0_6 = arith.constant 0 : index
    %c0_7 = arith.constant 0 : index
    %7 = vector.load %arg4[%c0_5, %c0_6, %c0_7] : memref<1x128x384xbf16, #tpu.memory_space<vmem>>, vector<1x128x384xbf16>
    %8 = vector.shape_cast %7 : vector<1x128x384xbf16> to vector<128x384xbf16>
    %cst = arith.constant dense<0.000000e+00> : vector<8x384xf32>
    %9 = tpu.matmul %6, %8, %cst {dimension_numbers = #tpu.dot_dimension_numbers<[1], [0], [0], [1], [0, 0, 1, 1], [], []>} : vector<8x128xbf16>, vector<128x384xbf16>, vector<8x384xf32> -> vector<8x384xf32>
    %c0_8 = arith.constant 0 : index
    %c0_9 = arith.constant 0 : index
    %c0_10 = arith.constant 0 : index
    %10 = vector.load %arg5[%c0_8, %c0_9, %c0_10] : memref<1x1x384xf32, #tpu.memory_space<vmem>>, vector<1x1x384xf32>
    %11 = vector.shape_cast %10 : vector<1x1x384xf32> to vector<1x384xf32>
    %12 = vector.broadcast %11 : vector<1x384xf32> to vector<8x384xf32>
    %13 = arith.addf %9, %12 : vector<8x384xf32>
    %14 = vector.extract_strided_slice %13 {offsets = [0, 0], sizes = [8, 32], strides = [1, 1]} : vector<8x384xf32> to vector<8x32xf32>
    %15 = arith.truncf %14 : vector<8x32xf32> to vector<8x32xbf16>
    %16 = vector.extract_strided_slice %13 {offsets = [0, 128], sizes = [8, 32], strides = [1, 1]} : vector<8x384xf32> to vector<8x32xf32>
    %17 = arith.truncf %16 : vector<8x32xf32> to vector<8x32xbf16>
    %18 = vector.extract_strided_slice %13 {offsets = [0, 256], sizes = [8, 32], strides = [1, 1]} : vector<8x384xf32> to vector<8x32xf32>
    %19 = arith.truncf %18 : vector<8x32xf32> to vector<8x32xbf16>
    %cst_11 = arith.constant dense<0.000000e+00> : vector<8x8xf32>
    %20 = tpu.matmul %15, %17, %cst_11 {dimension_numbers = #tpu.dot_dimension_numbers<[1], [1], [0], [0], [0, 0, 1, 0], [], []>} : vector<8x32xbf16>, vector<8x32xbf16>, vector<8x8xf32> -> vector<8x8xf32>
    %cst_12 = arith.constant 0.176776692 : f32
    %21 = vector.broadcast %cst_12 : f32 to vector<8x8xf32>
    %22 = arith.mulf %20, %21 : vector<8x8xf32>
    %23 = vector.broadcast %5 : vector<1x8xf32> to vector<8x8xf32>
    %24 = arith.addf %22, %23 : vector<8x8xf32>
    %cst_13 = arith.constant dense<0xFF800000> : vector<8xf32>
    %25 = vector.multi_reduction <maximumf>, %24, %cst_13 [1] : vector<8x8xf32> to vector<8xf32>
    %26 = vector.shape_cast %25 : vector<8xf32> to vector<8x1xf32>
    %27 = vector.broadcast %26 : vector<8x1xf32> to vector<8x8xf32>
    %28 = arith.subf %24, %27 : vector<8x8xf32>
    %29 = math.exp %28 : vector<8x8xf32>
    %cst_14 = arith.constant dense<0.000000e+00> : vector<8xf32>
    %30 = vector.multi_reduction <add>, %29, %cst_14 [1] : vector<8x8xf32> to vector<8xf32>
    %31 = vector.shape_cast %30 : vector<8xf32> to vector<8x1xf32>
    %32 = tpu.reciprocal %31 {approx = true} : vector<8x1xf32> -> vector<8x1xf32>
    %33 = vector.broadcast %32 : vector<8x1xf32> to vector<8x8xf32>
    %34 = arith.mulf %29, %33 : vector<8x8xf32>
    %35 = arith.truncf %34 : vector<8x8xf32> to vector<8x8xbf16>
    %cst_15 = arith.constant dense<0.000000e+00> : vector<8x32xf32>
    %36 = tpu.matmul %35, %19, %cst_15 {dimension_numbers = #tpu.dot_dimension_numbers<[1], [0], [0], [1], [0, 0, 1, 1], [], []>} : vector<8x8xbf16>, vector<8x32xbf16>, vector<8x32xf32> -> vector<8x32xf32>
    %37 = vector.extract_strided_slice %13 {offsets = [0, 32], sizes = [8, 32], strides = [1, 1]} : vector<8x384xf32> to vector<8x32xf32>
    %38 = arith.truncf %37 : vector<8x32xf32> to vector<8x32xbf16>
    %39 = vector.extract_strided_slice %13 {offsets = [0, 160], sizes = [8, 32], strides = [1, 1]} : vector<8x384xf32> to vector<8x32xf32>
    %40 = arith.truncf %39 : vector<8x32xf32> to vector<8x32xbf16>
    %41 = vector.extract_strided_slice %13 {offsets = [0, 288], sizes = [8, 32], strides = [1, 1]} : vector<8x384xf32> to vector<8x32xf32>
    %42 = arith.truncf %41 : vector<8x32xf32> to vector<8x32xbf16>
    %cst_16 = arith.constant dense<0.000000e+00> : vector<8x8xf32>
    %43 = tpu.matmul %38, %40, %cst_16 {dimension_numbers = #tpu.dot_dimension_numbers<[1], [1], [0], [0], [0, 0, 1, 0], [], []>} : vector<8x32xbf16>, vector<8x32xbf16>, vector<8x8xf32> -> vector<8x8xf32>
    %cst_17 = arith.constant 0.176776692 : f32
    %44 = vector.broadcast %cst_17 : f32 to vector<8x8xf32>
    %45 = arith.mulf %43, %44 : vector<8x8xf32>
    %46 = vector.broadcast %5 : vector<1x8xf32> to vector<8x8xf32>
    %47 = arith.addf %45, %46 : vector<8x8xf32>
    %cst_18 = arith.constant dense<0xFF800000> : vector<8xf32>
    %48 = vector.multi_reduction <maximumf>, %47, %cst_18 [1] : vector<8x8xf32> to vector<8xf32>
    %49 = vector.shape_cast %48 : vector<8xf32> to vector<8x1xf32>
    %50 = vector.broadcast %49 : vector<8x1xf32> to vector<8x8xf32>
    %51 = arith.subf %47, %50 : vector<8x8xf32>
    %52 = math.exp %51 : vector<8x8xf32>
    %cst_19 = arith.constant dense<0.000000e+00> : vector<8xf32>
    %53 = vector.multi_reduction <add>, %52, %cst_19 [1] : vector<8x8xf32> to vector<8xf32>
    %54 = vector.shape_cast %53 : vector<8xf32> to vector<8x1xf32>
    %55 = tpu.reciprocal %54 {approx = true} : vector<8x1xf32> -> vector<8x1xf32>
    %56 = vector.broadcast %55 : vector<8x1xf32> to vector<8x8xf32>
    %57 = arith.mulf %52, %56 : vector<8x8xf32>
    %58 = arith.truncf %57 : vector<8x8xf32> to vector<8x8xbf16>
    %cst_20 = arith.constant dense<0.000000e+00> : vector<8x32xf32>
    %59 = tpu.matmul %58, %42, %cst_20 {dimension_numbers = #tpu.dot_dimension_numbers<[1], [0], [0], [1], [0, 0, 1, 1], [], []>} : vector<8x8xbf16>, vector<8x32xbf16>, vector<8x32xf32> -> vector<8x32xf32>
    %60 = vector.extract_strided_slice %13 {offsets = [0, 64], sizes = [8, 32], strides = [1, 1]} : vector<8x384xf32> to vector<8x32xf32>
    %61 = arith.truncf %60 : vector<8x32xf32> to vector<8x32xbf16>
    %62 = vector.extract_strided_slice %13 {offsets = [0, 192], sizes = [8, 32], strides = [1, 1]} : vector<8x384xf32> to vector<8x32xf32>
    %63 = arith.truncf %62 : vector<8x32xf32> to vector<8x32xbf16>
    %64 = vector.extract_strided_slice %13 {offsets = [0, 320], sizes = [8, 32], strides = [1, 1]} : vector<8x384xf32> to vector<8x32xf32>
    %65 = arith.truncf %64 : vector<8x32xf32> to vector<8x32xbf16>
    %cst_21 = arith.constant dense<0.000000e+00> : vector<8x8xf32>
    %66 = tpu.matmul %61, %63, %cst_21 {dimension_numbers = #tpu.dot_dimension_numbers<[1], [1], [0], [0], [0, 0, 1, 0], [], []>} : vector<8x32xbf16>, vector<8x32xbf16>, vector<8x8xf32> -> vector<8x8xf32>
    %cst_22 = arith.constant 0.176776692 : f32
    %67 = vector.broadcast %cst_22 : f32 to vector<8x8xf32>
    %68 = arith.mulf %66, %67 : vector<8x8xf32>
    %69 = vector.broadcast %5 : vector<1x8xf32> to vector<8x8xf32>
    %70 = arith.addf %68, %69 : vector<8x8xf32>
    %cst_23 = arith.constant dense<0xFF800000> : vector<8xf32>
    %71 = vector.multi_reduction <maximumf>, %70, %cst_23 [1] : vector<8x8xf32> to vector<8xf32>
    %72 = vector.shape_cast %71 : vector<8xf32> to vector<8x1xf32>
    %73 = vector.broadcast %72 : vector<8x1xf32> to vector<8x8xf32>
    %74 = arith.subf %70, %73 : vector<8x8xf32>
    %75 = math.exp %74 : vector<8x8xf32>
    %cst_24 = arith.constant dense<0.000000e+00> : vector<8xf32>
    %76 = vector.multi_reduction <add>, %75, %cst_24 [1] : vector<8x8xf32> to vector<8xf32>
    %77 = vector.shape_cast %76 : vector<8xf32> to vector<8x1xf32>
    %78 = tpu.reciprocal %77 {approx = true} : vector<8x1xf32> -> vector<8x1xf32>
    %79 = vector.broadcast %78 : vector<8x1xf32> to vector<8x8xf32>
    %80 = arith.mulf %75, %79 : vector<8x8xf32>
    %81 = arith.truncf %80 : vector<8x8xf32> to vector<8x8xbf16>
    %cst_25 = arith.constant dense<0.000000e+00> : vector<8x32xf32>
    %82 = tpu.matmul %81, %65, %cst_25 {dimension_numbers = #tpu.dot_dimension_numbers<[1], [0], [0], [1], [0, 0, 1, 1], [], []>} : vector<8x8xbf16>, vector<8x32xbf16>, vector<8x32xf32> -> vector<8x32xf32>
    %83 = vector.extract_strided_slice %13 {offsets = [0, 96], sizes = [8, 32], strides = [1, 1]} : vector<8x384xf32> to vector<8x32xf32>
    %84 = arith.truncf %83 : vector<8x32xf32> to vector<8x32xbf16>
    %85 = vector.extract_strided_slice %13 {offsets = [0, 224], sizes = [8, 32], strides = [1, 1]} : vector<8x384xf32> to vector<8x32xf32>
    %86 = arith.truncf %85 : vector<8x32xf32> to vector<8x32xbf16>
    %87 = vector.extract_strided_slice %13 {offsets = [0, 352], sizes = [8, 32], strides = [1, 1]} : vector<8x384xf32> to vector<8x32xf32>
    %88 = arith.truncf %87 : vector<8x32xf32> to vector<8x32xbf16>
    %cst_26 = arith.constant dense<0.000000e+00> : vector<8x8xf32>
    %89 = tpu.matmul %84, %86, %cst_26 {dimension_numbers = #tpu.dot_dimension_numbers<[1], [1], [0], [0], [0, 0, 1, 0], [], []>} : vector<8x32xbf16>, vector<8x32xbf16>, vector<8x8xf32> -> vector<8x8xf32>
    %cst_27 = arith.constant 0.176776692 : f32
    %90 = vector.broadcast %cst_27 : f32 to vector<8x8xf32>
    %91 = arith.mulf %89, %90 : vector<8x8xf32>
    %92 = vector.broadcast %5 : vector<1x8xf32> to vector<8x8xf32>
    %93 = arith.addf %91, %92 : vector<8x8xf32>
    %cst_28 = arith.constant dense<0xFF800000> : vector<8xf32>
    %94 = vector.multi_reduction <maximumf>, %93, %cst_28 [1] : vector<8x8xf32> to vector<8xf32>
    %95 = vector.shape_cast %94 : vector<8xf32> to vector<8x1xf32>
    %96 = vector.broadcast %95 : vector<8x1xf32> to vector<8x8xf32>
    %97 = arith.subf %93, %96 : vector<8x8xf32>
    %98 = math.exp %97 : vector<8x8xf32>
    %cst_29 = arith.constant dense<0.000000e+00> : vector<8xf32>
    %99 = vector.multi_reduction <add>, %98, %cst_29 [1] : vector<8x8xf32> to vector<8xf32>
    %100 = vector.shape_cast %99 : vector<8xf32> to vector<8x1xf32>
    %101 = tpu.reciprocal %100 {approx = true} : vector<8x1xf32> -> vector<8x1xf32>
    %102 = vector.broadcast %101 : vector<8x1xf32> to vector<8x8xf32>
    %103 = arith.mulf %98, %102 : vector<8x8xf32>
    %104 = arith.truncf %103 : vector<8x8xf32> to vector<8x8xbf16>
    %cst_30 = arith.constant dense<0.000000e+00> : vector<8x32xf32>
    %105 = tpu.matmul %104, %88, %cst_30 {dimension_numbers = #tpu.dot_dimension_numbers<[1], [0], [0], [1], [0, 0, 1, 1], [], []>} : vector<8x8xbf16>, vector<8x32xbf16>, vector<8x32xf32> -> vector<8x32xf32>
    %106 = tpu.concatenate %36, %59, %82, %105 in 1 : vector<8x32xf32>, vector<8x32xf32>, vector<8x32xf32>, vector<8x32xf32> -> vector<8x128xf32>
    %107 = arith.truncf %106 : vector<8x128xf32> to vector<8x128xbf16>
    %c0_31 = arith.constant 0 : index
    %c0_32 = arith.constant 0 : index
    %c0_33 = arith.constant 0 : index
    %108 = vector.load %arg6[%c0_31, %c0_32, %c0_33] : memref<1x128x128xbf16, #tpu.memory_space<vmem>>, vector<1x128x128xbf16>
    %109 = vector.shape_cast %108 : vector<1x128x128xbf16> to vector<128x128xbf16>
    %cst_34 = arith.constant dense<0.000000e+00> : vector<8x128xf32>
    %110 = tpu.matmul %107, %109, %cst_34 {dimension_numbers = #tpu.dot_dimension_numbers<[1], [0], [0], [1], [0, 0, 1, 1], [], []>} : vector<8x128xbf16>, vector<128x128xbf16>, vector<8x128xf32> -> vector<8x128xf32>
    %c0_35 = arith.constant 0 : index
    %c0_36 = arith.constant 0 : index
    %c0_37 = arith.constant 0 : index
    %111 = vector.load %arg7[%c0_35, %c0_36, %c0_37] : memref<1x1x128xf32, #tpu.memory_space<vmem>>, vector<1x1x128xf32>
    %112 = vector.shape_cast %111 : vector<1x1x128xf32> to vector<1x128xf32>
    %113 = vector.broadcast %112 : vector<1x128xf32> to vector<8x128xf32>
    %114 = arith.addf %110, %113 : vector<8x128xf32>
    %115 = arith.addf %114, %3 : vector<8x128xf32>
    %c0_38 = arith.constant 0 : index
    %c0_39 = arith.constant 0 : index
    %c0_40 = arith.constant 0 : index
    %116 = vector.load %arg8[%c0_38, %c0_39, %c0_40] : memref<1x1x128xf32, #tpu.memory_space<vmem>>, vector<1x1x128xf32>
    %117 = vector.shape_cast %116 : vector<1x1x128xf32> to vector<1x128xf32>
    %c0_41 = arith.constant 0 : index
    %c0_42 = arith.constant 0 : index
    %c0_43 = arith.constant 0 : index
    %118 = vector.load %arg9[%c0_41, %c0_42, %c0_43] : memref<1x1x128xf32, #tpu.memory_space<vmem>>, vector<1x1x128xf32>
    %119 = vector.shape_cast %118 : vector<1x1x128xf32> to vector<1x128xf32>
    %cst_44 = arith.constant dense<0.000000e+00> : vector<8xf32>
    %120 = vector.multi_reduction <add>, %115, %cst_44 [1] : vector<8x128xf32> to vector<8xf32>
    %121 = vector.shape_cast %120 : vector<8xf32> to vector<8x1xf32>
    %cst_45 = arith.constant 1.280000e+02 : f32
    %122 = vector.broadcast %cst_45 : f32 to vector<8x1xf32>
    %123 = arith.divf %121, %122 : vector<8x1xf32>
    %124 = vector.broadcast %123 : vector<8x1xf32> to vector<8x128xf32>
    %125 = arith.subf %115, %124 : vector<8x128xf32>
    %126 = arith.mulf %125, %125 : vector<8x128xf32>
    %cst_46 = arith.constant dense<0.000000e+00> : vector<8xf32>
    %127 = vector.multi_reduction <add>, %126, %cst_46 [1] : vector<8x128xf32> to vector<8xf32>
    %128 = vector.shape_cast %127 : vector<8xf32> to vector<8x1xf32>
    %cst_47 = arith.constant 1.280000e+02 : f32
    %129 = vector.broadcast %cst_47 : f32 to vector<8x1xf32>
    %130 = arith.divf %128, %129 : vector<8x1xf32>
    %131 = vector.broadcast %123 : vector<8x1xf32> to vector<8x128xf32>
    %132 = arith.subf %115, %131 : vector<8x128xf32>
    %cst_48 = arith.constant 9.99999996E-13 : f32
    %133 = vector.broadcast %cst_48 : f32 to vector<8x1xf32>
    %134 = arith.addf %130, %133 : vector<8x1xf32>
    %135 = math.rsqrt %134 : vector<8x1xf32>
    %136 = vector.broadcast %135 : vector<8x1xf32> to vector<8x128xf32>
    %137 = arith.mulf %132, %136 : vector<8x128xf32>
    %138 = vector.broadcast %117 : vector<1x128xf32> to vector<8x128xf32>
    %139 = arith.mulf %137, %138 : vector<8x128xf32>
    %140 = vector.broadcast %119 : vector<1x128xf32> to vector<8x128xf32>
    %141 = arith.addf %139, %140 : vector<8x128xf32>
    %142 = arith.truncf %141 : vector<8x128xf32> to vector<8x128xbf16>
    %c0_49 = arith.constant 0 : index
    %c0_50 = arith.constant 0 : index
    %c0_51 = arith.constant 0 : index
    %143 = vector.load %arg10[%c0_49, %c0_50, %c0_51] : memref<1x128x256xbf16, #tpu.memory_space<vmem>>, vector<1x128x256xbf16>
    %144 = vector.shape_cast %143 : vector<1x128x256xbf16> to vector<128x256xbf16>
    %cst_52 = arith.constant dense<0.000000e+00> : vector<8x256xf32>
    %145 = tpu.matmul %142, %144, %cst_52 {dimension_numbers = #tpu.dot_dimension_numbers<[1], [0], [0], [1], [0, 0, 1, 1], [], []>} : vector<8x128xbf16>, vector<128x256xbf16>, vector<8x256xf32> -> vector<8x256xf32>
    %c0_53 = arith.constant 0 : index
    %c0_54 = arith.constant 0 : index
    %c0_55 = arith.constant 0 : index
    %146 = vector.load %arg11[%c0_53, %c0_54, %c0_55] : memref<1x1x256xf32, #tpu.memory_space<vmem>>, vector<1x1x256xf32>
    %147 = vector.shape_cast %146 : vector<1x1x256xf32> to vector<1x256xf32>
    %148 = vector.broadcast %147 : vector<1x256xf32> to vector<8x256xf32>
    %149 = arith.addf %145, %148 : vector<8x256xf32>
    %150 = arith.mulf %149, %149 : vector<8x256xf32>
    %151 = arith.mulf %149, %150 : vector<8x256xf32>
    %cst_56 = arith.constant 4.471500e-02 : f32
    %152 = vector.broadcast %cst_56 : f32 to vector<8x256xf32>
    %153 = arith.mulf %152, %151 : vector<8x256xf32>
    %154 = arith.addf %149, %153 : vector<8x256xf32>
    %cst_57 = arith.constant 0.797884583 : f32
    %155 = vector.broadcast %cst_57 : f32 to vector<8x256xf32>
    %156 = arith.mulf %155, %154 : vector<8x256xf32>
    %157 = math.tanh %156 : vector<8x256xf32>
    %cst_58 = arith.constant 1.000000e+00 : f32
    %158 = vector.broadcast %cst_58 : f32 to vector<8x256xf32>
    %159 = arith.addf %158, %157 : vector<8x256xf32>
    %cst_59 = arith.constant 5.000000e-01 : f32
    %160 = vector.broadcast %cst_59 : f32 to vector<8x256xf32>
    %161 = arith.mulf %160, %159 : vector<8x256xf32>
    %162 = arith.mulf %149, %161 : vector<8x256xf32>
    %163 = arith.truncf %162 : vector<8x256xf32> to vector<8x256xbf16>
    %c0_60 = arith.constant 0 : index
    %c0_61 = arith.constant 0 : index
    %c0_62 = arith.constant 0 : index
    %164 = vector.load %arg12[%c0_60, %c0_61, %c0_62] : memref<1x256x128xbf16, #tpu.memory_space<vmem>>, vector<1x256x128xbf16>
    %165 = vector.shape_cast %164 : vector<1x256x128xbf16> to vector<256x128xbf16>
    %cst_63 = arith.constant dense<0.000000e+00> : vector<8x128xf32>
    %166 = tpu.matmul %163, %165, %cst_63 {dimension_numbers = #tpu.dot_dimension_numbers<[1], [0], [0], [1], [0, 0, 1, 1], [], []>} : vector<8x256xbf16>, vector<256x128xbf16>, vector<8x128xf32> -> vector<8x128xf32>
    %c0_64 = arith.constant 0 : index
    %c0_65 = arith.constant 0 : index
    %c0_66 = arith.constant 0 : index
    %167 = vector.load %arg13[%c0_64, %c0_65, %c0_66] : memref<1x1x128xf32, #tpu.memory_space<vmem>>, vector<1x1x128xf32>
    %168 = vector.shape_cast %167 : vector<1x1x128xf32> to vector<1x128xf32>
    %169 = vector.broadcast %168 : vector<1x128xf32> to vector<8x128xf32>
    %170 = arith.addf %166, %169 : vector<8x128xf32>
    %171 = arith.addf %170, %141 : vector<8x128xf32>
    %c0_67 = arith.constant 0 : index
    %c0_68 = arith.constant 0 : index
    %c0_69 = arith.constant 0 : index
    %172 = vector.load %arg14[%c0_67, %c0_68, %c0_69] : memref<1x1x128xf32, #tpu.memory_space<vmem>>, vector<1x1x128xf32>
    %173 = vector.shape_cast %172 : vector<1x1x128xf32> to vector<1x128xf32>
    %c0_70 = arith.constant 0 : index
    %c0_71 = arith.constant 0 : index
    %c0_72 = arith.constant 0 : index
    %174 = vector.load %arg15[%c0_70, %c0_71, %c0_72] : memref<1x1x128xf32, #tpu.memory_space<vmem>>, vector<1x1x128xf32>
    %175 = vector.shape_cast %174 : vector<1x1x128xf32> to vector<1x128xf32>
    %cst_73 = arith.constant dense<0.000000e+00> : vector<8xf32>
    %176 = vector.multi_reduction <add>, %171, %cst_73 [1] : vector<8x128xf32> to vector<8xf32>
    %177 = vector.shape_cast %176 : vector<8xf32> to vector<8x1xf32>
    %cst_74 = arith.constant 1.280000e+02 : f32
    %178 = vector.broadcast %cst_74 : f32 to vector<8x1xf32>
    %179 = arith.divf %177, %178 : vector<8x1xf32>
    %180 = vector.broadcast %179 : vector<8x1xf32> to vector<8x128xf32>
    %181 = arith.subf %171, %180 : vector<8x128xf32>
    %182 = arith.mulf %181, %181 : vector<8x128xf32>
    %cst_75 = arith.constant dense<0.000000e+00> : vector<8xf32>
    %183 = vector.multi_reduction <add>, %182, %cst_75 [1] : vector<8x128xf32> to vector<8xf32>
    %184 = vector.shape_cast %183 : vector<8xf32> to vector<8x1xf32>
    %cst_76 = arith.constant 1.280000e+02 : f32
    %185 = vector.broadcast %cst_76 : f32 to vector<8x1xf32>
    %186 = arith.divf %184, %185 : vector<8x1xf32>
    %187 = vector.broadcast %179 : vector<8x1xf32> to vector<8x128xf32>
    %188 = arith.subf %171, %187 : vector<8x128xf32>
    %cst_77 = arith.constant 9.99999996E-13 : f32
    %189 = vector.broadcast %cst_77 : f32 to vector<8x1xf32>
    %190 = arith.addf %186, %189 : vector<8x1xf32>
    %191 = math.rsqrt %190 : vector<8x1xf32>
    %192 = vector.broadcast %191 : vector<8x1xf32> to vector<8x128xf32>
    %193 = arith.mulf %188, %192 : vector<8x128xf32>
    %194 = vector.broadcast %173 : vector<1x128xf32> to vector<8x128xf32>
    %195 = arith.mulf %193, %194 : vector<8x128xf32>
    %196 = vector.broadcast %175 : vector<1x128xf32> to vector<8x128xf32>
    %197 = arith.addf %195, %196 : vector<8x128xf32>
    %c0_78 = arith.constant 0 : index
    %c0_79 = arith.constant 0 : index
    %198 = vector.load %arg23[%c0_78, %c0_79] : memref<8x128xf32, #tpu.memory_space<vmem>>, vector<8x128xf32>
    tpu.vector_store %arg23[%c0_78, %c0_79], %197 {strides = array<i32>} : memref<8x128xf32, #tpu.memory_space<vmem>>, vector<8x128xf32>,
    %c1_i32 = arith.constant 1 : i32
    %199 = arith.cmpi eq, %arg1, %c1_i32 : i32
    %200 = arith.extui %199 : i1 to i32
    %c0_i32_80 = arith.constant 0 : i32
    %201 = arith.cmpi ne, %200, %c0_i32_80 : i32
    scf.if %201 {
      %202 = vector.extract_strided_slice %197 {offsets = [0, 0], sizes = [1, 128], strides = [1, 1]} : vector<8x128xf32> to vector<1x128xf32>
      %203 = arith.truncf %202 : vector<1x128xf32> to vector<1x128xbf16>
      %c0_81 = arith.constant 0 : index
      %c0_82 = arith.constant 0 : index
      %204 = vector.load %arg18[%c0_81, %c0_82] : memref<128x128xbf16, #tpu.memory_space<vmem>>, vector<128x128xbf16>
      %cst_83 = arith.constant dense<0.000000e+00> : vector<1x128xf32>
      %205 = tpu.matmul %203, %204, %cst_83 {dimension_numbers = #tpu.dot_dimension_numbers<[1], [0], [0], [1], [0, 0, 1, 1], [], []>} : vector<1x128xbf16>, vector<128x128xbf16>, vector<1x128xf32> -> vector<1x128xf32>
      %c0_84 = arith.constant 0 : index
      %c0_85 = arith.constant 0 : index
      %206 = vector.load %arg19[%c0_84, %c0_85] : memref<1x128xf32, #tpu.memory_space<vmem>>, vector<1x128xf32>
      %207 = arith.addf %205, %206 : vector<1x128xf32>
      %208 = math.tanh %207 : vector<1x128xf32>
      %209 = arith.truncf %208 : vector<1x128xf32> to vector<1x128xbf16>
      %c0_86 = arith.constant 0 : index
      %c0_87 = arith.constant 0 : index
      %210 = vector.load %arg20[%c0_86, %c0_87] : memref<128x128xbf16, #tpu.memory_space<vmem>>, vector<128x128xbf16>
      %cst_88 = arith.constant dense<0.000000e+00> : vector<1x128xf32>
      %211 = tpu.matmul %209, %210, %cst_88 {dimension_numbers = #tpu.dot_dimension_numbers<[1], [0], [0], [1], [0, 0, 1, 1], [], []>} : vector<1x128xbf16>, vector<128x128xbf16>, vector<1x128xf32> -> vector<1x128xf32>
      %c0_89 = arith.constant 0 : index
      %c0_90 = arith.constant 0 : index
      %212 = vector.load %arg21[%c0_89, %c0_90] : memref<1x128xf32, #tpu.memory_space<vmem>>, vector<1x128xf32>
      %213 = arith.addf %211, %212 : vector<1x128xf32>
      %cst_91 = arith.constant dense<0xFF800000> : vector<1xf32>
      %214 = vector.multi_reduction <maximumf>, %213, %cst_91 [1] : vector<1x128xf32> to vector<1xf32>
      %215 = vector.shape_cast %214 : vector<1xf32> to vector<1x1xf32>
      %216 = vector.broadcast %215 : vector<1x1xf32> to vector<1x128xf32>
      %217 = arith.subf %213, %216 : vector<1x128xf32>
      %218 = math.exp %217 : vector<1x128xf32>
      %cst_92 = arith.constant dense<0.000000e+00> : vector<1xf32>
      %219 = vector.multi_reduction <add>, %218, %cst_92 [1] : vector<1x128xf32> to vector<1xf32>
      %220 = vector.shape_cast %219 : vector<1xf32> to vector<1x1xf32>
      %221 = tpu.reciprocal %220 {approx = true} : vector<1x1xf32> -> vector<1x1xf32>
      %222 = vector.broadcast %221 : vector<1x1xf32> to vector<1x128xf32>
      %223 = arith.mulf %218, %222 : vector<1x128xf32>
      %c0_93 = arith.constant 0 : index
      %c0_94 = arith.constant 0 : index
      %c0_95 = arith.constant 0 : index
      %224 = vector.load %arg22[%c0_93, %c0_94, %c0_95] : memref<1x1x128xf32, #tpu.memory_space<vmem>>, vector<1x1x128xf32>
      %225 = vector.shape_cast %224 : vector<1x1x128xf32> to vector<1x128xf32>
      %226 = vector.shape_cast %223 : vector<1x128xf32> to vector<1x1x128xf32>
      tpu.vector_store %arg22[%c0_93, %c0_94, %c0_95], %226 {strides = array<i32>} : memref<1x1x128xf32, #tpu.memory_space<vmem>>, vector<1x1x128xf32>,
    } else {
    }
    return
  }
  func.func @transform_0(%arg0: i32, %arg1: i32) -> (i32, i32, i32) {
    %c0_i32 = arith.constant 0 : i32
    %c0_i32_0 = arith.constant 0 : i32
    %c0_i32_1 = arith.constant 0 : i32
    return %arg0, %c0_i32, %c0_i32_0 : i32, i32, i32
  }
  func.func @transform_1(%arg0: i32, %arg1: i32) -> (i32, i32, i32) {
    %c0_i32 = arith.constant 0 : i32
    %c0_i32_0 = arith.constant 0 : i32
    %c0_i32_1 = arith.constant 0 : i32
    return %arg0, %c0_i32, %c0_i32_0 : i32, i32, i32
  }
  func.func @transform_2(%arg0: i32, %arg1: i32) -> (i32, i32, i32) {
    %c0_i32 = arith.constant 0 : i32
    %c0_i32_0 = arith.constant 0 : i32
    %c0_i32_1 = arith.constant 0 : i32
    return %arg1, %c0_i32, %c0_i32_0 : i32, i32, i32
  }
  func.func @transform_3(%arg0: i32, %arg1: i32) -> (i32, i32, i32) {
    %c0_i32 = arith.constant 0 : i32
    %c0_i32_0 = arith.constant 0 : i32
    %c0_i32_1 = arith.constant 0 : i32
    return %arg1, %c0_i32, %c0_i32_0 : i32, i32, i32
  }
  func.func @transform_4(%arg0: i32, %arg1: i32) -> (i32, i32, i32) {
    %c0_i32 = arith.constant 0 : i32
    %c0_i32_0 = arith.constant 0 : i32
    %c0_i32_1 = arith.constant 0 : i32
    return %arg1, %c0_i32, %c0_i32_0 : i32, i32, i32
  }
  func.func @transform_5(%arg0: i32, %arg1: i32) -> (i32, i32, i32) {
    %c0_i32 = arith.constant 0 : i32
    %c0_i32_0 = arith.constant 0 : i32
    %c0_i32_1 = arith.constant 0 : i32
    return %arg1, %c0_i32, %c0_i32_0 : i32, i32, i32
  }
  func.func @transform_6(%arg0: i32, %arg1: i32) -> (i32, i32, i32) {
    %c0_i32 = arith.constant 0 : i32
    %c0_i32_0 = arith.constant 0 : i32
    %c0_i32_1 = arith.constant 0 : i32
    return %arg1, %c0_i32, %c0_i32_0 : i32, i32, i32
  }
  func.func @transform_7(%arg0: i32, %arg1: i32) -> (i32, i32, i32) {
    %c0_i32 = arith.constant 0 : i32
    %c0_i32_0 = arith.constant 0 : i32
    %c0_i32_1 = arith.constant 0 : i32
    return %arg1, %c0_i32, %c0_i32_0 : i32, i32, i32
  }
  func.func @transform_8(%arg0: i32, %arg1: i32) -> (i32, i32, i32) {
    %c0_i32 = arith.constant 0 : i32
    %c0_i32_0 = arith.constant 0 : i32
    %c0_i32_1 = arith.constant 0 : i32
    return %arg1, %c0_i32, %c0_i32_0 : i32, i32, i32
  }
  func.func @transform_9(%arg0: i32, %arg1: i32) -> (i32, i32, i32) {
    %c0_i32 = arith.constant 0 : i32
    %c0_i32_0 = arith.constant 0 : i32
    %c0_i32_1 = arith.constant 0 : i32
    return %arg1, %c0_i32, %c0_i32_0 : i32, i32, i32
  }
  func.func @transform_10(%arg0: i32, %arg1: i32) -> (i32, i32, i32) {
    %c0_i32 = arith.constant 0 : i32
    %c0_i32_0 = arith.constant 0 : i32
    %c0_i32_1 = arith.constant 0 : i32
    return %arg1, %c0_i32, %c0_i32_0 : i32, i32, i32
  }
  func.func @transform_11(%arg0: i32, %arg1: i32) -> (i32, i32, i32) {
    %c0_i32 = arith.constant 0 : i32
    %c0_i32_0 = arith.constant 0 : i32
    %c0_i32_1 = arith.constant 0 : i32
    return %arg1, %c0_i32, %c0_i32_0 : i32, i32, i32
  }
  func.func @transform_12(%arg0: i32, %arg1: i32) -> (i32, i32, i32) {
    %c0_i32 = arith.constant 0 : i32
    %c0_i32_0 = arith.constant 0 : i32
    %c0_i32_1 = arith.constant 0 : i32
    return %arg1, %c0_i32, %c0_i32_0 : i32, i32, i32
  }
  func.func @transform_13(%arg0: i32, %arg1: i32) -> (i32, i32, i32) {
    %c0_i32 = arith.constant 0 : i32
    %c0_i32_0 = arith.constant 0 : i32
    %c0_i32_1 = arith.constant 0 : i32
    return %arg1, %c0_i32, %c0_i32_0 : i32, i32, i32
  }
  func.func @transform_14(%arg0: i32, %arg1: i32) -> (i32, i32) {
    %c0_i32 = arith.constant 0 : i32
    %c0_i32_0 = arith.constant 0 : i32
    %c0_i32_1 = arith.constant 0 : i32
    return %c0_i32, %c0_i32_0 : i32, i32
  }
  func.func @transform_15(%arg0: i32, %arg1: i32) -> (i32, i32) {
    %c0_i32 = arith.constant 0 : i32
    %c0_i32_0 = arith.constant 0 : i32
    %c0_i32_1 = arith.constant 0 : i32
    return %c0_i32, %c0_i32_0 : i32, i32
  }
  func.func @transform_16(%arg0: i32, %arg1: i32) -> (i32, i32) {
    %c0_i32 = arith.constant 0 : i32
    %c0_i32_0 = arith.constant 0 : i32
    %c0_i32_1 = arith.constant 0 : i32
    return %c0_i32, %c0_i32_0 : i32, i32
  }
  func.func @transform_17(%arg0: i32, %arg1: i32) -> (i32, i32) {
    %c0_i32 = arith.constant 0 : i32
    %c0_i32_0 = arith.constant 0 : i32
    %c0_i32_1 = arith.constant 0 : i32
    return %c0_i32, %c0_i32_0 : i32, i32
  }
  func.func @transform_18(%arg0: i32, %arg1: i32) -> (i32, i32) {
    %c0_i32 = arith.constant 0 : i32
    %c0_i32_0 = arith.constant 0 : i32
    %c0_i32_1 = arith.constant 0 : i32
    return %c0_i32, %c0_i32_0 : i32, i32
  }
  func.func @transform_19(%arg0: i32, %arg1: i32) -> (i32, i32) {
    %c0_i32 = arith.constant 0 : i32
    %c0_i32_0 = arith.constant 0 : i32
    %c0_i32_1 = arith.constant 0 : i32
    return %c0_i32, %c0_i32_0 : i32, i32
  }
  func.func @transform_20(%arg0: i32, %arg1: i32) -> (i32, i32, i32) {
    %c0_i32 = arith.constant 0 : i32
    %c0_i32_0 = arith.constant 0 : i32
    %c0_i32_1 = arith.constant 0 : i32
    return %arg0, %c0_i32, %c0_i32_0 : i32, i32, i32
  }
}

</mosaic_0001>

<bundles_post_ra>
// kernel: tpu_custom_call.1
= control target key start
LH: loop header
LB: loop body
LE: loop exit
PB: predicated region body
PF: predicated region fallthrough
CT: control target
= control target key end

     0   :  { %s5598_s0 = inlined_call_operand.hbm [shape: f32[2,8,128], index: 0, kind: input, shape index: {}]   ;;  %s5599_s1 = inlined_call_operand.hbm [shape: f32[2,1,8], index: 1, kind: input, shape index: {}]   ;;  %s5600_s2 = inlined_call_operand.hbm [shape: bf16[2,128,384], index: 2, kind: input, shape index: {}]   ;;  %s5601_s3 = inlined_call_operand.hbm [shape: f32[2,1,384], index: 3, kind: input, shape index: {}]   ;;  %s5602_s4 = inlined_call_operand.hbm [shape: bf16[2,128,128], index: 4, kind: input, shape index: {}]   ;;  %s5603_s5 = inlined_call_operand.hbm [shape: f32[2,1,128], index: 5, kind: input, shape index: {}]   ;;  %s5604_s6 = inlined_call_operand.hbm [shape: f32[2,1,128], index: 6, kind: input, shape index: {}]   ;;  %s5605_s7 = inlined_call_operand.hbm [shape: f32[2,1,128], index: 7, kind: input, shape index: {}]   ;;  %s5606_s8 = inlined_call_operand.hbm [shape: bf16[2,128,256], index: 8, kind: input, shape index: {}]   ;;  %s5607_s9 = inlined_call_operand.vmem [shape: f32[2,1,256], index: 9, kind: input, shape index: {}]   ;;  %s5608_s10 = inlined_call_operand.hbm [shape: bf16[2,256,128], index: 10, kind: input, shape index: {}]   ;;  %s5609_s11 = inlined_call_operand.hbm [shape: f32[2,1,128], index: 11, kind: input, shape index: {}]   ;;  %s5610_s12 = inlined_call_operand.hbm [shape: f32[2,1,128], index: 12, kind: input, shape index: {}]   ;;  %s5611_s13 = inlined_call_operand.hbm [shape: f32[2,1,128], index: 13, kind: input, shape index: {}]   ;;  %s5612_s14 = inlined_call_operand.hbm [shape: f32[1,128], index: 14, kind: input, shape index: {}]   ;;  %s5613_s15 = inlined_call_operand.hbm [shape: f32[1,128], index: 15, kind: input, shape index: {}]   ;;  %s5614_s16 = inlined_call_operand.hbm [shape: bf16[128,128], index: 16, kind: input, shape index: {}]   ;;  %s5615_s17 = inlined_call_operand.hbm [shape: f32[1,128], index: 17, kind: input, shape index: {}]   ;;  %s5616_s18 = inlined_call_operand.vmem [shape: bf16[128,128], index: 18, kind: input, shape index: {}]   ;;  %s5617_s19 = inlined_call_operand.vmem [shape: f32[1,128], index: 19, kind: input, shape index: {}]   ;;  %s5618_s20 = inlined_call_operand.hbm [shape: f32[2,1,128], index: 20, kind: output, shape index: {}]  }
   0x1   :  { %5680 = sst [smem:[#allocation59_spill]] %s5598_s0 }
   0x2   :  { %5681 = sst [smem:[#allocation60_spill]] %s5599_s1 }
   0x3   :  { %5682 = sst [smem:[#allocation61_spill]] %s5600_s2 }
   0x4   :  { %5683 = sst [smem:[#allocation62_spill]] %s5601_s3 }
   0x5   :  { %5684 = sst [smem:[#allocation63_spill]] %s5602_s4 }
   0x6   :  { %5685 = sst [smem:[#allocation64_spill]] %s5603_s5 }
   0x7   :  { %5686 = sst [smem:[#allocation65_spill]] %s5604_s6 }
   0x8   :  { %5687 = sst [smem:[#allocation66_spill]] %s5605_s7 }
   0x9   :  { %5688 = sst [smem:[#allocation67_spill]] %s5607_s9 }
   0xa   :  { %5689 = sst [smem:[#allocation68_spill]] %s5608_s10 }
   0xb   :  { %5690 = sst [smem:[#allocation69_spill]] %s5609_s11 }
   0xc   :  { %5691 = sst [smem:[#allocation70_spill]] %s5610_s12 }
   0xd   :  { %5692 = sst [smem:[#allocation71_spill]] %s5611_s13 }
   0xe   :  { %5693 = sst [smem:[#allocation72_spill]] %s5612_s14 }
   0xf   :  { %5694 = sst [smem:[#allocation73_spill]] %s5614_s16 }
  0x10   :  { %5695 = sst [smem:[#allocation74_spill]] %s5615_s17 }
  0x11   :  { %5696 = sst [smem:[#allocation75_spill]] %s5616_s18 }
  0x12   :  { %5697 = sst [smem:[#allocation76_spill]] %s5617_s19 }
  0x13   :  { %5698 = sst [smem:[#allocation77_spill]] %s5618_s20 }
  0x14   :  { %25 = vsyncpa [#allocation4], 0 }
  0x15   :  { %27 = vsyncpa [#allocation4 + $0x1], 0 }
  0x16   :  { %28 = vsyncpa [#allocation7], 0 }
  0x17   :  { %30 = vsyncpa [#allocation7 + $0x1], 0 }
  0x18   :  { %31 = vsyncpa [#allocation10], 0 }
  0x19   :  { %33 = vsyncpa [#allocation10 + $0x1], 0 }
  0x1a   :  { %34 = vsyncpa [#allocation13], 0 }
  0x1b   :  { %36 = vsyncpa [#allocation13 + $0x1], 0 }
  0x1c   :  { %37 = vsyncpa [#allocation16], 0 }
  0x1d   :  { %39 = vsyncpa [#allocation16 + $0x1], 0 }
  0x1e   :  { %40 = vsyncpa [#allocation19], 0 }
  0x1f   :  { %42 = vsyncpa [#allocation19 + $0x1], 0 }
  0x20   :  { %43 = vsyncpa [#allocation22], 0 }
  0x21   :  { %45 = vsyncpa [#allocation22 + $0x1], 0 }
  0x22   :  { %46 = vsyncpa [#allocation25], 0 }
  0x23   :  { %47 = vsyncpa [#allocation28], 0 }
  0x24   :  { %48 = vsyncpa [#allocation5], 0 }
  0x25   :  { %50 = vsyncpa [#allocation5 + $0x1], 0  ;;  %s4530_s1 = smov 0   ;;  %s4532_s22 = smov 0  }
  0x26   :  { %s4534_s23 = smov 0   ;;  %s4536_s24 = smov 0  }
  0x27   :  { %s4538_s2 = smov 0   ;;  %s4540_s25 = smov 0  }
  0x28   :  { %s4542_s3 = smov 0   ;;  %s4544_s26 = smov 0  }
  0x29   :  { %s4546_s27 = smov 0   ;;  %s4548_s28 = smov 0  }
  0x2a   :  { %s4550_s4 = smov 0  }
  0x2b LB: > { %5699 = sst [smem:[#allocation42_spill]] %s4355_s22  ;;  %s4586_s29 = sadd.s32 4294967295, %s4391_s4   ;;  %s4391_s4 = sphi %s4550_s4, %s56_s4   ;;  %s4387_s28 = sphi %s4548_s28, %s5816_s28   ;;  %s4383_s27 = sphi %s4546_s27, %s5815_s27   ;;  %s4379_s26 = sphi %s4544_s26, %s5814_s26   ;;  %s4375_s3 = sphi %s4542_s3, %s5813_s3   ;;  %s4371_s25 = sphi %s4540_s25, %s5808_s25   ;;  %s4367_s2 = sphi %s4538_s2, %s5812_s2   ;;  %s4363_s24 = sphi %s4536_s24, %s5811_s24   ;;  %s4359_s23 = sphi %s4534_s23, %s5806_s23   ;;  %s4355_s22 = sphi %s4532_s22, %s5805_s22   ;;  %s4351_s1 = sphi %s4530_s1, %s5804_s1  }
  0x2c   : > { %5700 = sst [smem:[#allocation43_spill]] %s4359_s23  ;;  %p3037_p0 = scmp.ge.s32.totalorder %s4391_s4, 1 }
  0x2d   : > { %5701 = sst [smem:[#allocation44_spill]] %s4363_s24  ;;  %p5630_p1 = scmp.eq.s32.totalorder %s4586_s29, 0 }
  0x2e   : > { %5702 = sst [smem:[#allocation45_spill]] %s4371_s25  ;;  %p589_p2 = scmp.lt.s32.totalorder %s4391_s4, 5 }
  0x2f   : > { %5703 = sst [smem:[#allocation46_spill]] %s4375_s3  ;;  %s4393_s0 = smov [#allocation24]  }
  0x30   : > { %5704 = sst [smem:[#allocation47_spill]] %s4379_s26  ;;  %p4591_p3 = pnand %p3037_p0, %p589_p2 }
  0x31   : > { %5705 = sst [smem:[#allocation48_spill]] %s4391_s4  ;;  %s602_s21 = sshll.u32 %s4393_s0, 4  ;;  %s603_s21 = int_to_ptr.vmem [resolvable:$true] %s602_s21 }
  0x32   : > { %5706 = sst [smem:[#allocation49_spill]] %s4586_s29  ;;  %p3430_p4 = pneg %p4591_p3 }
  0x33   : > { %s5707_s30 = scalar_select %p4591_p3, 1, 0 }
  0x34   : > { %s4394_s20 = smov [#allocation27]   ;;  %p4599_p5 = pnand %p3430_p4, %p5630_p1 }
  0x35   : > { %5708 = sst [smem:[#allocation50_spill]] %s5707_s30  ;;  %s623_s26 = sshll.u32 %s4394_s20, 4  ;;  %s4603_s26 = int_to_ptr.vmem [resolvable:$true] %s623_s26 }
  0x36   : > { %s5709_s19 = scalar_select %p4599_p5, 1, 0 }
  0x37   : > { %s5710_s14 = sld [smem:[#allocation72_spill]]  ;;  %p4613_p7 = pneg %p4599_p5 }
  0x39   : > { %s5711_s0 = scalar_select %p4613_p7, 1, 0 }
  0x3d   : > { %s3731_s3 = scalar_lea.hbm %s5710_s14, 16 }
  0x3e   : > { %p3732_p6 = scmp.ne.s32.totalorder %s5710_s14, %s3731_s3  ;;  %p3738_p10 = scmp.lt.u32.totalorder %s3731_s3, %s5710_s14 }
  0x40   : > { %p3734_p8 = pnand %p4613_p7, %p3732_p6 }
  0x42   : > { %p3735_p9 = pneg %p3734_p8 }
  0x44   : > { %p3740_p11 = pnand %p3738_p10, %p3735_p9 }
  0x46   : > { %3743 = shalt.err (!%p3740_p11)
}
  0x47   : > { %s3744_s9 = scalar_lea.vmem %s603_s21, 16  ;;  %s3751_s11 = scalar_lea.vmem %s603_s21, 32 }
  0x48   : > { %p3745_p12 = scmp.ne.s32.totalorder %s603_s21, %s3744_s9  ;;  %p3752_p2 = scmp.lt.s32.totalorder %s603_s21, %s603_s21 }
  0x49   : > { %p3753_p4 = scmp.lt.s32.totalorder %s3751_s11, %s3744_s9 }
  0x4a   : > { %p3747_p13 = pnand %p3745_p12, %p4613_p7 }
  0x4b   : > { %p3754_p1 = por %p3753_p4, %p3752_p2 }
  0x4c   : > { %p3748_p0 = pneg %p3747_p13 }
  0x4e   : > { %p3755_p3 = pnand %p3754_p1, %p3748_p0 }
  0x50   : > { %3758 = shalt.err (!%p3755_p3)
}
  0x51   : > { %3433 = dma.hbm_to_vmem [thread:$0]  (!%p4599_p5), %s5710_s14, 16, %s603_s21, [#allocation25]  }
  0x52   : > { %s5712_s16 = sld [smem:[#allocation73_spill]] }
  0x58   : > { %s3759_s20 = scalar_lea.hbm %s5712_s16, 1024 }
  0x59   : > { %p3760_p6 = scmp.ne.s32.totalorder %s5712_s16, %s3759_s20  ;;  %p3766_p1 = scmp.lt.u32.totalorder %s3759_s20, %s5712_s16 }
  0x5b   : > { %p3762_p8 = pnand %p3760_p6, %p4613_p7 }
  0x5d   : > { %p3763_p9 = pneg %p3762_p8 }
  0x5f   : > { %p3768_p3 = pnand %p3766_p1, %p3763_p9 }
  0x61   : > { %3771 = shalt.err (!%p3768_p3)
}
  0x62   : > { %s3772_s21 = scalar_lea.vmem %s4603_s26, 1024  ;;  %p3780_p13 = scmp.lt.s32.totalorder %s4603_s26, %s4603_s26 }
  0x63   : > { %p3773_p10 = scmp.ne.s32.totalorder %s4603_s26, %s3772_s21  ;;  %p3781_p0 = scmp.lt.s32.totalorder %s3772_s21, %s3772_s21 }
  0x65   : > { %p3775_p11 = pnand %p3773_p10, %p4613_p7  ;;  %p3782_p2 = por %p3781_p0, %p3780_p13 }
  0x67   : > { %p3776_p12 = pneg %p3775_p11 }
  0x69   : > { %p3783_p4 = pnand %p3782_p2, %p3776_p12 }
  0x6b   : > { %3786 = shalt.err (!%p3783_p4)
}
  0x6c   : > { %s5634_s6 = smov 64   ;;  %s5636_s17 = smov 4  }
  0x6d   : > { %3439 = dma.hbm_to_vmem [thread:$0]  (!%p4599_p5), %s5712_s16, 1024, %s4603_s26, [#allocation28], %s5634_s6, %s5634_s6, %s5636_s17  }
  0x6e   : > { %s3036_s3 = sadd.s32 4294967294, %s4391_s4   ;;  %s65_s30 = sadd.s32 1, %s4383_s27 }
  0x6f   : > { %p66_p6 = scmp.ge.s32.totalorder %s65_s30, 2  ;;  %s68_s20 = sadd.s32 1, %s4387_s28 }
  0x70   : > { %s75_s9 = sadd.s32 1, %s4371_s25  ;;  %p5639_p8 = scmp.ne.s32.totalorder %s4371_s25, %s4367_s2 }
  0x71   : > { %s5818_s30 = smov (%p66_p6, %s65_s30), 0  ;;  %s5820_s20 = smov (!%p66_p6, %s68_s20), %s4387_s28 }
  0x72   : > { %5713 = sst [smem:[#allocation51_spill]] %s5818_s30  ;;  %p83_p9 = scmp.eq.s32.totalorder %s4391_s4, 0 }
  0x73   : > { %p5638_p1 = scmp.ne.s32.totalorder %s4367_s2, %s4363_s24  ;;  %p70_p3 = scmp.ge.s32.totalorder %s5820_s20, 2 }
  0x74   : > { %s124_s26 = ssub.s32 %s4383_s27, %s5818_s30  ;;  %p4674_p10 = por %p83_p9, %p5639_p8 }
  0x75   : > { %p5715_p11 = scmp.eq.s32.totalorder %s4586_s29, 0  ;;  %s5822_s20 = smov (%p70_p3, %s5820_s20), 0 }
  0x76   : > { %5718 = sst [smem:[#allocation53_spill]] %s5822_s20  ;;  %p125_p13 = scmp.eq.s32.totalorder %s124_s26, 0 }
  0x77   : > { %p4683_p12 = por %p5715_p11, %p5638_p1  ;;  %s127_s13 = sadd.s32 1, %s4359_s23 }
  0x78   : > { %s72_s18 = ssub.s32 %s4387_s28, %s5822_s20  ;;  %p134_p0 = scmp.ne.s32.totalorder %s4359_s23, %s4355_s22 }
  0x79   : > { %s5716_s21 = scalar_select %p4683_p12, 1, 0 }
  0x7a   : > { %p73_p2 = scmp.eq.s32.totalorder %s72_s18, 0  ;;  %p140_p4 = scmp.ne.s32.totalorder %s4355_s22, %s4351_s1 }
  0x7b   : > { %5717 = sst [smem:[#allocation52_spill]] %s5716_s21  ;;  %p4704_p6 = por %p134_p0, %p83_p9 }
  0x7c   : > { %s4697_s6 = scalar_select %p125_p13, %s4359_s23, %s127_s13  }
  0x7d   : > { %s4700_s17 = scalar_select %p73_p2, %s4371_s25, %s75_s9  }
  0x7e   : > { %5719 = sst [smem:[#allocation54_spill]] %s4697_s6  ;;  %p5722_p3 = pmov %p5715_p11 }
  0x7f   : > { %5720 = sst [smem:[#allocation55_spill]] %s4700_s17  ;;  %p576_p1 = scmp.eq.s32.totalorder %s4586_s29, 3 }
  0x80   : > { %p4710_p11 = por %p140_p4, %p5722_p3  ;;  %p582_p8 = scmp.eq.s32.totalorder %s3036_s3, 3 }
  0x81   : > { %p5651_p12 = scmp.lt.s32.totalorder %s4391_s4, 4  ;;  %s4717_s18 = sand.u32 1, %s4371_s25  }
  0x82   : > { %s5723_s26 = scalar_select %p4710_p11, 1, 0 }
  0x83   : > { %p5725_p13 = scmp.ne.s32.totalorder %s4371_s25, %s4367_s2  ;;  %p5728_p9 = scmp.ne.s32.totalorder %s4367_s2, %s4363_s24 }
  0x84   : > { %5724 = sst [smem:[#allocation56_spill]] %s5723_s26  ;;  %p4737_p4 = pnand %p5651_p12, %p4674_p10 }
  0x85   : > { %p4722_p2 = por %p576_p1, %p5725_p13  ;;  %p4729_p0 = por %p582_p8, %p5728_p9 }
  0x86   : > { %s5731_s13 = scalar_select %p4737_p4, 1, 0 }
  0x87   : > { %s5726_s1 = scalar_select %p4722_p2, 1, 0 }
  0x88   : > { %s5729_s9 = scalar_select %p4729_p0, 1, 0 }
  0x89   : > { %5727 = sst [smem:[#allocation57_spill]] %s5726_s1  ;;  %s4742_s3 = sand.u32 1, %s4391_s4  }
  0x8a   : > { %5730 = sst [smem:[#allocation58_spill]] %s5729_s9  ;;  %s3045_s16 = sshll.u32 %s4387_s28, 4 }
  0x8b   : > { %s5732_s17 = sld [smem:[#allocation60_spill]]  ;;  %s675_s11 = scalar_lea.vmem [#allocation6], %s4717_s18 }
  0x8c   : > { %s682_s6 = sshll.u32 %s675_s11, 4  ;;  %s4754_s9 = sand.u32 1, %s4359_s23   ;;  %s4751_s6 = int_to_ptr.vmem [resolvable:$true] %s682_s6 }
  0x8d   : > { %s5659_s24 = scalar_lea.sflag [#allocation7], %s4742_s3  ;;  %p5661_p1 = pneg %p4737_p4 }
  0x91   : > { %s4748_s25 = scalar_lea.hbm %s5732_s17, %s3045_s16  ;;  %s3792_s20 = scalar_lea.hbm %s5732_s17, 32 }
  0x92   : > { %s3787_s1 = scalar_lea.hbm %s4748_s25, 16  ;;  %p3793_p13 = scmp.lt.u32.totalorder %s4748_s25, %s5732_s17 }
  0x93   : > { %p3788_p8 = scmp.ne.s32.totalorder %s4748_s25, %s3787_s1  ;;  %p3794_p9 = scmp.lt.u32.totalorder %s3792_s20, %s3787_s1 }
  0x94   : > { %p3796_p0 = scmp.lt.u32.totalorder %s3787_s1, %s4748_s25 }
  0x95   : > { %p3790_p10 = pnand %p5661_p1, %p3788_p8  ;;  %p3795_p12 = por %p3794_p9, %p3793_p13 }
  0x97   : > { %p3791_p3 = pneg %p3790_p10  ;;  %p3797_p2 = por %p3796_p0, %p3795_p12 }
  0x99   : > { %p3798_p11 = pnand %p3797_p2, %p3791_p3 }
  0x9b   : > { %3801 = shalt.err (!%p3798_p11)
}
  0x9c   : > { %s3802_s11 = scalar_lea.vmem %s4751_s6, 16  ;;  %s4397_s16 = smov [#allocation6]  }
  0x9d   : > { %p3803_p8 = scmp.ne.s32.totalorder %s4751_s6, %s3802_s11  ;;  %s3807_s30 = sshll.u32 %s4397_s16, 4  ;;  %s3808_s30 = int_to_ptr.vmem [resolvable:$false] %s3807_s30 }
  0x9e   : > { %s3809_s22 = scalar_lea.vmem %s3808_s30, 32  ;;  %p3810_p7 = scmp.lt.s32.totalorder %s4751_s6, %s3808_s30 }
  0x9f   : > { %p3805_p10 = pnand %p3803_p8, %p5661_p1  ;;  %p3811_p13 = scmp.lt.s32.totalorder %s3809_s22, %s3802_s11 }
  0xa1   : > { %p3806_p5 = pneg %p3805_p10  ;;  %p3812_p9 = por %p3811_p13, %p3810_p7 }
  0xa3   : > { %p3813_p12 = pnand %p3812_p9, %p3806_p5 }
  0xa5   : > { %3816 = shalt.err (!%p3813_p12)
}
  0xa6   : > { %3449 = dma.hbm_to_vmem [thread:$0]  (!%p4737_p4), %s4748_s25, 16, %s4751_s6, %s5659_s24  }
  0xa7   : > { %p5733_p11 = scmp.lt.s32.totalorder %s4391_s4, 4  ;;  %s3382_s1 = smul.u32 3, %s4754_s9 }
  0xa8   : > { %s3383_s20 = smul.u32 48, %s4383_s27  ;;  %s5735_s30 = sld [smem:[#allocation62_spill]] }
  0xa9   : > { %p4788_p2 = pnand %p5733_p11, %p4704_p6  ;;  %s714_s17 = scalar_lea.vmem [#allocation9], %s3382_s1 }
  0xaa   : > { %s722_s25 = sshll.u32 %s714_s17, 4  ;;  %s4802_s14 = sshll.u32 %s4383_s27, 4  ;;  %s4799_s25 = int_to_ptr.vmem [resolvable:$true] %s722_s25 }
  0xab   : > { %s5734_s26 = scalar_select %p4788_p2, 1, 0 }
  0xac   : > { %p4809_p7 = pneg %p4788_p2 }
  0xae   : > { %s4797_s22 = scalar_lea.hbm %s5735_s30, %s3383_s20  ;;  %s3822_s17 = scalar_lea.hbm %s5735_s30, 96 }
  0xaf   : > { %s3817_s24 = scalar_lea.hbm %s4797_s22, 48  ;;  %p3823_p3 = scmp.lt.u32.totalorder %s4797_s22, %s5735_s30 }
  0xb0   : > { %p3818_p5 = scmp.ne.s32.totalorder %s4797_s22, %s3817_s24  ;;  %p3824_p8 = scmp.lt.u32.totalorder %s3822_s17, %s3817_s24 }
  0xb1   : > { %s5736_s23 = scalar_select %p4809_p7, 1, 0 }
  0xb2   : > { %p3820_p6 = pnand %p4809_p7, %p3818_p5  ;;  %p3825_p10 = por %p3824_p8, %p3823_p3 }
  0xb3   : > { %p3826_p13 = scmp.lt.u32.totalorder %s3817_s24, %s4797_s22 }
  0xb4   : > { %p3821_p0 = pneg %p3820_p6 }
  0xb5   : > { %p3827_p9 = por %p3826_p13, %p3825_p10 }
  0xb7   : > { %p3828_p12 = pnand %p3827_p9, %p3821_p0 }
  0xb9   : > { %3831 = shalt.err (!%p3828_p12)
}
  0xba   : > { %s3832_s6 = scalar_lea.vmem %s4799_s25, 48  ;;  %s4398_s20 = smov [#allocation9]  }
  0xbb   : > { %p3833_p11 = scmp.ne.s32.totalorder %s4799_s25, %s3832_s6  ;;  %s3837_s11 = sshll.u32 %s4398_s20, 4  ;;  %s3838_s11 = int_to_ptr.vmem [resolvable:$false] %s3837_s11 }
  0xbc   : > { %s3839_s1 = scalar_lea.vmem %s3838_s11, 96  ;;  %p3840_p1 = scmp.lt.s32.totalorder %s4799_s25, %s3838_s11 }
  0xbd   : > { %p3835_p5 = pnand %p3833_p11, %p4809_p7  ;;  %p3841_p4 = scmp.lt.s32.totalorder %s3839_s1, %s3832_s6 }
  0xbf   : > { %p3836_p6 = pneg %p3835_p5  ;;  %p3842_p3 = por %p3841_p4, %p3840_p1 }
  0xc1   : > { %p3843_p8 = pnand %p3842_p3, %p3836_p6 }
  0xc3   : > { %3846 = shalt.err (!%p3843_p8)
}
  0xc4   : > { %s5737_s24 = scalar_lea.sflag [#allocation10], %s4742_s3  ;;  %s5738_s5 = sld [smem:[#allocation64_spill]] }
  0xc5   : > { %3455 = dma.hbm_to_vmem [thread:$0]  (!%p4788_p2), %s4797_s22, 48, %s4799_s25, %s5737_s24  }
  0xc6   : > { %s753_s6 = scalar_lea.vmem [#allocation12], %s4754_s9 }
  0xc7   : > { %s760_s11 = sshll.u32 %s753_s6, 4  ;;  %s761_s11 = int_to_ptr.vmem [resolvable:$true] %s760_s11 }
  0xca   : > { %s4838_s20 = scalar_lea.hbm %s5738_s5, %s4802_s14  ;;  %s3852_s25 = scalar_lea.hbm %s5738_s5, 32 }
  0xcb   : > { %s3847_s30 = scalar_lea.hbm %s4838_s20, 16  ;;  %p3853_p10 = scmp.lt.u32.totalorder %s4838_s20, %s5738_s5 }
  0xcc   : > { %p3848_p4 = scmp.ne.s32.totalorder %s4838_s20, %s3847_s30  ;;  %p3854_p13 = scmp.lt.u32.totalorder %s3852_s25, %s3847_s30 }
  0xcd   : > { %p3856_p12 = scmp.lt.u32.totalorder %s3847_s30, %s4838_s20 }
  0xce   : > { %p3850_p1 = pnand %p3848_p4, %p4809_p7  ;;  %p3855_p9 = por %p3854_p13, %p3853_p10 }
  0xd0   : > { %p3851_p0 = pneg %p3850_p1  ;;  %p3857_p11 = por %p3856_p12, %p3855_p9 }
  0xd2   : > { %p3858_p5 = pnand %p3857_p11, %p3851_p0 }
  0xd4   : > { %3861 = shalt.err (!%p3858_p5)
}
  0xd5   : > { %s3862_s16 = scalar_lea.vmem %s761_s11, 16  ;;  %s4399_s6 = smov [#allocation12]  }
  0xd6   : > { %p3863_p6 = scmp.ne.s32.totalorder %s761_s11, %s3862_s16  ;;  %s3867_s1 = sshll.u32 %s4399_s6, 4  ;;  %s3868_s1 = int_to_ptr.vmem [resolvable:$false] %s3867_s1 }
  0xd7   : > { %s3869_s4 = scalar_lea.vmem %s3868_s1, 32  ;;  %p3870_p4 = scmp.lt.s32.totalorder %s761_s11, %s3868_s1 }
  0xd8   : > { %p3865_p3 = pnand %p3863_p6, %p4809_p7  ;;  %p3871_p1 = scmp.lt.s32.totalorder %s3869_s4, %s3862_s16 }
  0xda   : > { %p3866_p8 = pneg %p3865_p3  ;;  %p3872_p2 = por %p3871_p1, %p3870_p4 }
  0xdc   : > { %p3873_p10 = pnand %p3872_p2, %p3866_p8 }
  0xde   : > { %3876 = shalt.err (!%p3873_p10)
}
  0xdf   : > { %p5739_p13 = scmp.ne.s32.totalorder %s5734_s26, 0  ;;  %s5740_s30 = scalar_lea.sflag [#allocation13], %s4742_s3 }
  0xe0   : > { %s5741_s7 = sld [smem:[#allocation66_spill]]  ;;  %s787_s1 = scalar_lea.vmem [#allocation15], %s4754_s9 }
  0xe1   : > { %3461 = dma.hbm_to_vmem [thread:$0]  (!%p5739_p13), %s4838_s20, 16, %s761_s11, %s5740_s30  }
  0xe2   : > { %s794_s17 = sshll.u32 %s787_s1, 4  ;;  %s795_s17 = int_to_ptr.vmem [resolvable:$true] %s794_s17 }
  0xe6   : > { %s4865_s24 = scalar_lea.hbm %s5741_s7, %s4802_s14  ;;  %s3882_s30 = scalar_lea.hbm %s5741_s7, 32 }
  0xe7   : > { %s3877_s4 = scalar_lea.hbm %s4865_s24, 16  ;;  %p3883_p12 = scmp.lt.u32.totalorder %s4865_s24, %s5741_s7 }
  0xe8   : > { %p3878_p2 = scmp.ne.s32.totalorder %s4865_s24, %s3877_s4  ;;  %p3884_p11 = scmp.lt.u32.totalorder %s3882_s30, %s3877_s4 }
  0xe9   : > { %p3886_p6 = scmp.lt.u32.totalorder %s3877_s4, %s4865_s24 }
  0xea   : > { %p3880_p0 = pnand %p3878_p2, %p4809_p7  ;;  %p3885_p5 = por %p3884_p11, %p3883_p12 }
  0xec   : > { %p3881_p9 = pneg %p3880_p0  ;;  %p3887_p3 = por %p3886_p6, %p3885_p5 }
  0xee   : > { %p3888_p8 = pnand %p3887_p3, %p3881_p9 }
  0xf0   : > { %3891 = shalt.err (!%p3888_p8)
}
  0xf1   : > { %s3892_s1 = scalar_lea.vmem %s795_s17, 16  ;;  %s4400_s16 = smov [#allocation15]  }
  0xf2   : > { %p3893_p4 = scmp.ne.s32.totalorder %s795_s17, %s3892_s1  ;;  %s3897_s6 = sshll.u32 %s4400_s16, 4  ;;  %s3898_s6 = int_to_ptr.vmem [resolvable:$false] %s3897_s6 }
  0xf3   : > { %s3899_s20 = scalar_lea.vmem %s3898_s6, 32  ;;  %p3900_p2 = scmp.lt.s32.totalorder %s795_s17, %s3898_s6 }
  0xf4   : > { %p3895_p1 = pnand %p3893_p4, %p4809_p7  ;;  %p3901_p0 = scmp.lt.s32.totalorder %s3899_s20, %s3892_s1 }
  0xf6   : > { %p3896_p10 = pneg %p3895_p1  ;;  %p3902_p13 = por %p3901_p0, %p3900_p2 }
  0xf8   : > { %p3903_p11 = pnand %p3902_p13, %p3896_p10 }
  0xfa   : > { %3906 = shalt.err (!%p3903_p11)
}
  0xfb   : > { %p5742_p12 = scmp.ne.s32.totalorder %s5734_s26, 0  ;;  %s5743_s4 = scalar_lea.sflag [#allocation16], %s4742_s3 }
  0xfc   : > { %s3176_s11 = sshll.u32 %s4383_s27, 11  ;;  %s5744_s16 = sshll.u32 %s4754_s9, 7 }
  0xfd   : > { %3467 = dma.hbm_to_vmem [thread:$0]  (!%p5742_p12), %s4865_s24, 16, %s795_s17, %s5743_s4  }
  0xfe   : > { %s805_s30 = scalar_lea.vmem [#allocation17], %s5744_s16  ;;  %s4895_s1 = scalar_lea.hbm %s5606_s8, %s3176_s11 }
  0xff   : > { %s812_s22 = sshll.u32 %s805_s30, 4  ;;  %s5745_s10 = sld [smem:[#allocation68_spill]]  ;;  %s4897_s22 = int_to_ptr.vmem [resolvable:$true] %s812_s22 }
 0x100   : > { %s5746_s29 = smov %s5744_s16  ;;  %s5673_s4 = scalar_lea.sflag [#allocation19], %s4742_s3 }
 0x101   : > { %s833_s24 = scalar_lea.vmem [#allocation18], %s5746_s29 }
 0x102   : > { %s840_s17 = sshll.u32 %s833_s24, 4  ;;  %s4906_s17 = int_to_ptr.vmem [resolvable:$true] %s840_s17 }
 0x105   : > { %s4902_s7 = scalar_lea.hbm %s5745_s10, %s3176_s11  ;;  %s3912_s5 = scalar_lea.hbm %s5745_s10, 4096 }
 0x106   : > { %s3907_s16 = scalar_lea.hbm %s4902_s7, 2048  ;;  %p3913_p6 = scmp.lt.u32.totalorder %s4902_s7, %s5745_s10 }
 0x107   : > { %p3908_p13 = scmp.ne.s32.totalorder %s4902_s7, %s3907_s16  ;;  %p3914_p3 = scmp.lt.u32.totalorder %s3912_s5, %s3907_s16 }
 0x108   : > { %p3916_p4 = scmp.lt.u32.totalorder %s3907_s16, %s4902_s7 }
 0x109   : > { %p3910_p9 = pnand %p3908_p13, %p4809_p7  ;;  %p3915_p8 = por %p3914_p3, %p3913_p6 }
 0x10b   : > { %p3911_p5 = pneg %p3910_p9  ;;  %p3917_p1 = por %p3916_p4, %p3915_p8 }
 0x10d   : > { %p3918_p10 = pnand %p3917_p1, %p3911_p5 }
 0x10f   : > { %3921 = shalt.err (!%p3918_p10)
}
 0x110   : > { %s3922_s29 = scalar_lea.vmem %s4906_s17, 2048  ;;  %s4401_s20 = smov [#allocation18]  }
 0x111   : > { %p3923_p2 = scmp.ne.s32.totalorder %s4906_s17, %s3922_s29  ;;  %s3927_s24 = sshll.u32 %s4401_s20, 4  ;;  %s3928_s24 = int_to_ptr.vmem [resolvable:$false] %s3927_s24 }
 0x112   : > { %s3929_s30 = scalar_lea.vmem %s3928_s24, 4096  ;;  %p3930_p13 = scmp.lt.s32.totalorder %s4906_s17, %s3928_s24 }
 0x113   : > { %p3925_p0 = pnand %p3923_p2, %p4809_p7  ;;  %p3931_p9 = scmp.lt.s32.totalorder %s3929_s30, %s3922_s29 }
 0x115   : > { %p3926_p11 = pneg %p3925_p0  ;;  %p3932_p6 = por %p3931_p9, %p3930_p13 }
 0x117   : > { %p3933_p3 = pnand %p3932_p6, %p3926_p11 }
 0x119   : > { %3936 = shalt.err (!%p3933_p3)
}
 0x11a   : > { %s5747_s16 = smov 4   ;;  %s5748_s6 = smov 64  }
 0x11b   : > { %3473 = dma.hbm_to_vmem [thread:$0]  (!%p5742_p12), %s4902_s7, 2048, %s4906_s17, %s5673_s4, %s5748_s6, %s5748_s6, %s5747_s16  }
 0x11c   : > { %s5749_s12 = sld [smem:[#allocation70_spill]]  ;;  %s870_s29 = scalar_lea.vmem [#allocation21], %s4754_s9 }
 0x11d   : > { %s877_s20 = sshll.u32 %s870_s29, 4  ;;  %s4402_s24 = smov [#allocation26]   ;;  %s4942_s20 = int_to_ptr.vmem [resolvable:$true] %s877_s20 }
 0x11e   : > { %s4944_s30 = sshll.u32 %s4402_s24, 4  ;;  %s5675_s10 = scalar_lea.sflag [#allocation22], %s4742_s3  ;;  %s614_s30 = int_to_ptr.vmem [resolvable:$true] %s4944_s30 }
 0x122   : > { %s4939_s25 = scalar_lea.hbm %s5749_s12, %s4802_s14  ;;  %s3942_s5 = scalar_lea.hbm %s5749_s12, 32 }
 0x123   : > { %s3937_s21 = scalar_lea.hbm %s4939_s25, 16  ;;  %p3943_p1 = scmp.lt.u32.totalorder %s4939_s25, %s5749_s12 }
 0x124   : > { %p3938_p5 = scmp.ne.s32.totalorder %s4939_s25, %s3937_s21  ;;  %p3944_p10 = scmp.lt.u32.totalorder %s3942_s5, %s3937_s21 }
 0x125   : > { %p3946_p0 = scmp.lt.u32.totalorder %s3937_s21, %s4939_s25 }
 0x126   : > { %p3940_p8 = pnand %p3938_p5, %p4809_p7  ;;  %p3945_p2 = por %p3944_p10, %p3943_p1 }
 0x128   : > { %p3941_p4 = pneg %p3940_p8  ;;  %p3947_p11 = por %p3946_p0, %p3945_p2 }
 0x12a   : > { %p3948_p13 = pnand %p3947_p11, %p3941_p4 }
 0x12c   : > { %3951 = shalt.err (!%p3948_p13)
}
 0x12d   : > { %s3952_s29 = scalar_lea.vmem %s4942_s20, 16  ;;  %s4403_s24 = smov [#allocation21]  }
 0x12e   : > { %p3953_p9 = scmp.ne.s32.totalorder %s4942_s20, %s3952_s29  ;;  %s3957_s7 = sshll.u32 %s4403_s24, 4  ;;  %s3958_s7 = int_to_ptr.vmem [resolvable:$false] %s3957_s7 }
 0x12f   : > { %s3959_s4 = scalar_lea.vmem %s3958_s7, 32  ;;  %p3960_p5 = scmp.lt.s32.totalorder %s4942_s20, %s3958_s7 }
 0x130   : > { %p3955_p6 = pnand %p3953_p9, %p4809_p7  ;;  %p3961_p8 = scmp.lt.s32.totalorder %s3959_s4, %s3952_s29 }
 0x132   : > { %p3956_p3 = pneg %p3955_p6  ;;  %p3962_p1 = por %p3961_p8, %p3960_p5 }
 0x134   : > { %p3963_p10 = pnand %p3962_p1, %p3956_p3 }
 0x136   : > { %3966 = shalt.err (!%p3963_p10)
}
 0x137   : > { %3479 = dma.hbm_to_vmem [thread:$0]  (!%p5742_p12), %s4939_s25, 16, %s4942_s20, %s5675_s10  }
 0x138   : > { %s3967_s5 = scalar_lea.hbm %s5613_s15, 16  ;;  %p5750_p2 = scmp.ne.s32.totalorder %s5711_s0, 0 }
 0x139   : > { %p3968_p4 = scmp.ne.s32.totalorder %s5613_s15, %s3967_s5  ;;  %p3974_p13 = scmp.lt.u32.totalorder %s3967_s5, %s5613_s15 }
 0x13b   : > { %p3970_p0 = pnand %p3968_p4, %p5750_p2 }
 0x13d   : > { %p3971_p11 = pneg %p3970_p0 }
 0x13f   : > { %p3976_p9 = pnand %p3974_p13, %p3971_p11 }
 0x141   : > { %3979 = shalt.err (!%p3976_p9)
}
 0x142   : > { %s3980_s4 = scalar_lea.vmem %s614_s30, 16  ;;  %s3987_s25 = scalar_lea.vmem %s614_s30, 32 }
 0x143   : > { %p3981_p6 = scmp.ne.s32.totalorder %s614_s30, %s3980_s4  ;;  %p3988_p8 = scmp.lt.s32.totalorder %s614_s30, %s614_s30 }
 0x144   : > { %p3989_p1 = scmp.lt.s32.totalorder %s3987_s25, %s3980_s4 }
 0x145   : > { %p3983_p3 = pnand %p3981_p6, %p5750_p2 }
 0x146   : > { %p3990_p10 = por %p3989_p1, %p3988_p8 }
 0x147   : > { %p3984_p5 = pneg %p3983_p3 }
 0x149   : > { %p3991_p12 = pnand %p3990_p10, %p3984_p5 }
 0x14b   : > { %3994 = shalt.err (!%p3991_p12)
}
 0x14c   : > { %p5751_p4 = scmp.ne.s32.totalorder %s5709_s19, 0  ;;  %s4404_s17 = smov [#allocation29]  }
 0x14d   : > { %s637_s5 = sshll.u32 %s4404_s17, 4  ;;  %s3043_s11 = sshll.u32 %s4717_s18, 3  ;;  %s638_s5 = int_to_ptr.vmem [resolvable:$true] %s637_s5 }
 0x14e   : > { %3436 = dma.hbm_to_vmem [thread:$0]  (!%p5751_p4), %s5613_s15, 16, %s614_s30, [#allocation25]  }
 0x14f   : > { %s5752_s7 = sld [smem:[#allocation74_spill]] }
 0x155   : > { %s3995_s10 = scalar_lea.hbm %s5752_s7, 16 }
 0x156   : > { %p3996_p12 = scmp.ne.s32.totalorder %s5752_s7, %s3995_s10  ;;  %p4002_p13 = scmp.lt.u32.totalorder %s3995_s10, %s5752_s7 }
 0x158   : > { %p3998_p0 = pnand %p3996_p12, %p5750_p2 }
 0x15a   : > { %p3999_p11 = pneg %p3998_p0 }
 0x15c   : > { %p4004_p9 = pnand %p4002_p13, %p3999_p11 }
 0x15e   : > { %4007 = shalt.err (!%p4004_p9)
}
 0x15f   : > { %s4008_s30 = scalar_lea.vmem %s638_s5, 16  ;;  %s4015_s21 = scalar_lea.vmem %s638_s5, 32 }
 0x160   : > { %p4009_p6 = scmp.ne.s32.totalorder %s638_s5, %s4008_s30  ;;  %p4016_p8 = scmp.lt.s32.totalorder %s638_s5, %s638_s5 }
 0x161   : > { %p4017_p1 = scmp.lt.s32.totalorder %s4015_s21, %s4008_s30 }
 0x162   : > { %p4011_p3 = pnand %p4009_p6, %p5750_p2 }
 0x163   : > { %p4018_p10 = por %p4017_p1, %p4016_p8 }
 0x164   : > { %p4012_p5 = pneg %p4011_p3 }
 0x166   : > { %p4019_p7 = pnand %p4018_p10, %p4012_p5 }
 0x168   : > { %4022 = shalt.err (!%p4019_p7)
}
 0x169   : > { %3442 = dma.hbm_to_vmem [thread:$0]  (!%p5751_p4), %s5752_s7, 16, %s638_s5, [#allocation28]  }
 0x16a   : > { %s3044_s10 = sshll.u32 %s4387_s28, 7  ;;  %s5753_s29 = sld [smem:[#allocation59_spill]] }
 0x16b   : > { %s658_s25 = scalar_lea.vmem [#allocation3], %s3043_s11  ;;  %s3380_s20 = smul.u32 192, %s4754_s9 }
 0x16c   : > { %s665_s19 = sshll.u32 %s658_s25, 4  ;;  %s655_s30 = scalar_lea.sflag [#allocation4], %s4717_s18  ;;  %s5014_s19 = int_to_ptr.vmem [resolvable:$true] %s665_s19 }
 0x16d   : > { %p5754_p2 = scmp.ne.s32.totalorder %s5731_s13, 0 }
 0x16f   : > { %p5755_p4 = pneg %p5754_p2 }
 0x170   : > { %s5012_s4 = scalar_lea.hbm %s5753_s29, %s3044_s10  ;;  %s4028_s24 = scalar_lea.hbm %s5753_s29, 256 }
 0x171   : > { %s4023_s21 = scalar_lea.hbm %s5012_s4, 128  ;;  %p4029_p11 = scmp.lt.u32.totalorder %s5012_s4, %s5753_s29 }
 0x172   : > { %p4024_p7 = scmp.ne.s32.totalorder %s5012_s4, %s4023_s21  ;;  %p4030_p13 = scmp.lt.u32.totalorder %s4028_s24, %s4023_s21 }
 0x173   : > { %p4032_p6 = scmp.lt.u32.totalorder %s4023_s21, %s5012_s4 }
 0x174   : > { %p4026_p12 = pnand %p4024_p7, %p5755_p4  ;;  %p4031_p9 = por %p4030_p13, %p4029_p11 }
 0x176   : > { %p4027_p0 = pneg %p4026_p12  ;;  %p4033_p3 = por %p4032_p6, %p4031_p9 }
 0x178   : > { %p4034_p5 = pnand %p4033_p3, %p4027_p0 }
 0x17a   : > { %4037 = shalt.err (!%p4034_p5)
}
 0x17b   : > { %s4038_s18 = scalar_lea.vmem %s5014_s19, 128  ;;  %p5756_p1 = pmov %p5755_p4 }
 0x17c   : > { %p4039_p8 = scmp.ne.s32.totalorder %s5014_s19, %s4038_s18  ;;  %s4405_s11 = smov [#allocation3]  }
 0x17d   : > { %s4043_s0 = sshll.u32 %s4405_s11, 4  ;;  %s4044_s0 = int_to_ptr.vmem [resolvable:$false] %s4043_s0 }
 0x17e   : > { %p4041_p10 = pnand %p4039_p8, %p5756_p1  ;;  %s4045_s25 = scalar_lea.vmem %s4044_s0, 256 }
 0x17f   : > { %p4046_p4 = scmp.lt.s32.totalorder %s5014_s19, %s4044_s0  ;;  %p4047_p12 = scmp.lt.s32.totalorder %s4045_s25, %s4038_s18 }
 0x180   : > { %p4042_p7 = pneg %p4041_p10 }
 0x181   : > { %p4048_p11 = por %p4047_p12, %p4046_p4 }
 0x183   : > { %p4049_p13 = pnand %p4048_p11, %p4042_p7 }
 0x185   : > { %4052 = shalt.err (!%p4049_p13)
}
 0x186   : > { %3446 = dma.hbm_to_vmem [thread:$0]  (!%p5754_p2), %s5012_s4, 128, %s5014_s19, %s655_s30  }
 0x187   : > { %s3381_s21 = smul.u32 3072, %s4383_s27  ;;  %s693_s5 = scalar_lea.vmem [#allocation8], %s3380_s20 }
 0x188   : > { %s700_s17 = sshll.u32 %s693_s5, 4  ;;  %s5757_s12 = sld [smem:[#allocation61_spill]]  ;;  %s5049_s17 = int_to_ptr.vmem [resolvable:$true] %s700_s17 }
 0x189   : > { %s3048_s13 = sshll.u32 %s4754_s9, 6  ;;  %p5758_p9 = scmp.ne.s32.totalorder %s5736_s23, 0 }
 0x18e   : > { %s5047_s18 = scalar_lea.hbm %s5757_s12, %s3381_s21  ;;  %s4058_s20 = scalar_lea.hbm %s5757_s12, 6144 }
 0x18f   : > { %s4053_s11 = scalar_lea.hbm %s5047_s18, 3072  ;;  %p4059_p3 = scmp.lt.u32.totalorder %s5047_s18, %s5757_s12 }
 0x190   : > { %p4054_p0 = scmp.ne.s32.totalorder %s5047_s18, %s4053_s11  ;;  %p4060_p5 = scmp.lt.u32.totalorder %s4058_s20, %s4053_s11 }
 0x191   : > { %p4062_p1 = scmp.lt.u32.totalorder %s4053_s11, %s5047_s18 }
 0x192   : > { %p4056_p2 = pnand %p4054_p0, %p5758_p9  ;;  %p4061_p8 = por %p4060_p5, %p4059_p3 }
 0x194   : > { %p4057_p6 = pneg %p4056_p2  ;;  %p4063_p10 = por %p4062_p1, %p4061_p8 }
 0x196   : > { %p4064_p7 = pnand %p4063_p10, %p4057_p6 }
 0x198   : > { %4067 = shalt.err (!%p4064_p7)
}
 0x199   : > { %s4068_s25 = scalar_lea.vmem %s5049_s17, 3072  ;;  %s4406_s21 = smov [#allocation8]  }
 0x19a   : > { %p4069_p4 = scmp.ne.s32.totalorder %s5049_s17, %s4068_s25  ;;  %s4073_s5 = sshll.u32 %s4406_s21, 4  ;;  %s4074_s5 = int_to_ptr.vmem [resolvable:$false] %s4073_s5 }
 0x19b   : > { %s4075_s24 = scalar_lea.vmem %s4074_s5, 6144  ;;  %p4076_p13 = scmp.lt.s32.totalorder %s5049_s17, %s4074_s5 }
 0x19c   : > { %p4071_p12 = pnand %p4069_p4, %p5758_p9  ;;  %p4077_p0 = scmp.lt.s32.totalorder %s4075_s24, %s4068_s25 }
 0x19e   : > { %p4072_p11 = pneg %p4071_p12  ;;  %p4078_p2 = por %p4077_p0, %p4076_p13 }
 0x1a0   : > { %p4079_p3 = pnand %p4078_p2, %p4072_p11 }
 0x1a2   : > { %4082 = shalt.err (!%p4079_p3)
}
 0x1a3   : > { %s4407_s10 = smov 192   ;;  %s4408_s11 = smov 12  }
 0x1a4   : > { %p5759_p6 = scmp.ne.s32.totalorder %s5734_s26, 0  ;;  %s5760_s4 = scalar_lea.sflag [#allocation7], %s4742_s3 }
 0x1a5   : > { %s3175_s19 = sshll.u32 %s4383_s27, 10  ;;  %s5761_s0 = sld [smem:[#allocation63_spill]] }
 0x1a6   : > { %3452 = dma.hbm_to_vmem [thread:$0]  (!%p5759_p6), %s5047_s18, 3072, %s5049_s17, %s5760_s4, %s4407_s10, %s4407_s10, %s4408_s11  }
 0x1a7   : > { %s733_s21 = scalar_lea.vmem [#allocation11], %s3048_s13 }
 0x1a8   : > { %s740_s5 = sshll.u32 %s733_s21, 4  ;;  %s5083_s5 = int_to_ptr.vmem [resolvable:$true] %s740_s5 }
 0x1ab   : > { %s5079_s25 = scalar_lea.hbm %s5761_s0, %s3175_s19  ;;  %s4088_s10 = scalar_lea.hbm %s5761_s0, 2048 }
 0x1ac   : > { %s4083_s24 = scalar_lea.hbm %s5079_s25, 1024  ;;  %p4089_p10 = scmp.lt.u32.totalorder %s5079_s25, %s5761_s0 }
 0x1ad   : > { %p4084_p5 = scmp.ne.s32.totalorder %s5079_s25, %s4083_s24  ;;  %p4090_p7 = scmp.lt.u32.totalorder %s4088_s10, %s4083_s24 }
 0x1ae   : > { %p4092_p12 = scmp.lt.u32.totalorder %s4083_s24, %s5079_s25 }
 0x1af   : > { %p4086_p8 = pnand %p4084_p5, %p5758_p9  ;;  %p4091_p4 = por %p4090_p7, %p4089_p10 }
 0x1b1   : > { %p4087_p1 = pneg %p4086_p8  ;;  %p4093_p11 = por %p4092_p12, %p4091_p4 }
 0x1b3   : > { %p4094_p13 = pnand %p4093_p11, %p4087_p1 }
 0x1b5   : > { %4097 = shalt.err (!%p4094_p13)
}
 0x1b6   : > { %s4098_s13 = scalar_lea.vmem %s5083_s5, 1024  ;;  %s4409_s19 = smov [#allocation11]  }
 0x1b7   : > { %p4099_p0 = scmp.ne.s32.totalorder %s5083_s5, %s4098_s13  ;;  %s4103_s20 = sshll.u32 %s4409_s19, 4  ;;  %s4104_s20 = int_to_ptr.vmem [resolvable:$false] %s4103_s20 }
 0x1b8   : > { %s4105_s30 = scalar_lea.vmem %s4104_s20, 2048  ;;  %p4106_p5 = scmp.lt.s32.totalorder %s5083_s5, %s4104_s20 }
 0x1b9   : > { %p4101_p2 = pnand %p4099_p0, %p5758_p9  ;;  %p4107_p8 = scmp.lt.s32.totalorder %s4105_s30, %s4098_s13 }
 0x1bb   : > { %p4102_p3 = pneg %p4101_p2  ;;  %p4108_p10 = por %p4107_p8, %p4106_p5 }
 0x1bd   : > { %p4109_p7 = pnand %p4108_p10, %p4102_p3 }
 0x1bf   : > { %4112 = shalt.err (!%p4109_p7)
}
 0x1c0   : > { %s5762_s21 = scalar_lea.sflag [#allocation10], %s4742_s3  ;;  %s5763_s18 = sld [smem:[#allocation65_spill]] }
 0x1c1   : > { %3458 = dma.hbm_to_vmem [thread:$0]  (!%p5759_p6), %s5079_s25, 1024, %s5083_s5, %s5762_s21, %s5748_s6, %s5748_s6, %s5747_s16  }
 0x1c2   : > { %s770_s11 = scalar_lea.vmem [#allocation14], %s4754_s9 }
 0x1c3   : > { %s777_s4 = sshll.u32 %s770_s11, 4  ;;  %s778_s4 = int_to_ptr.vmem [resolvable:$true] %s777_s4 }
 0x1c6   : > { %s5115_s10 = scalar_lea.hbm %s5763_s18, %s4802_s14  ;;  %s4118_s16 = scalar_lea.hbm %s5763_s18, 32 }
 0x1c7   : > { %s4113_s13 = scalar_lea.hbm %s5115_s10, 16  ;;  %p4119_p11 = scmp.lt.u32.totalorder %s5115_s10, %s5763_s18 }
 0x1c8   : > { %p4114_p1 = scmp.ne.s32.totalorder %s5115_s10, %s4113_s13  ;;  %p4120_p13 = scmp.lt.u32.totalorder %s4118_s16, %s4113_s13 }
 0x1c9   : > { %p4122_p2 = scmp.lt.u32.totalorder %s4113_s13, %s5115_s10 }
 0x1ca   : > { %p4116_p4 = pnand %p4114_p1, %p5758_p9  ;;  %p4121_p0 = por %p4120_p13, %p4119_p11 }
 0x1cc   : > { %p4117_p12 = pneg %p4116_p4  ;;  %p4123_p3 = por %p4122_p2, %p4121_p0 }
 0x1ce   : > { %p4124_p5 = pnand %p4123_p3, %p4117_p12 }
 0x1d0   : > { %4127 = shalt.err (!%p4124_p5)
}
 0x1d1   : > { %s4128_s5 = scalar_lea.vmem %s778_s4, 16  ;;  %s4410_s30 = smov [#allocation14]  }
 0x1d2   : > { %p4129_p8 = scmp.ne.s32.totalorder %s778_s4, %s4128_s5  ;;  %s4133_s21 = sshll.u32 %s4410_s30, 4  ;;  %s4134_s21 = int_to_ptr.vmem [resolvable:$false] %s4133_s21 }
 0x1d3   : > { %s4135_s24 = scalar_lea.vmem %s4134_s21, 32  ;;  %p4136_p1 = scmp.lt.s32.totalorder %s778_s4, %s4134_s21 }
 0x1d4   : > { %p4131_p10 = pnand %p4129_p8, %p5758_p9  ;;  %p4137_p4 = scmp.lt.s32.totalorder %s4135_s24, %s4128_s5 }
 0x1d6   : > { %p4132_p7 = pneg %p4131_p10  ;;  %p4138_p6 = por %p4137_p4, %p4136_p1 }
 0x1d8   : > { %p4139_p11 = pnand %p4138_p6, %p4132_p7 }
 0x1da   : > { %4142 = shalt.err (!%p4139_p11)
}
 0x1db   : > { %p5764_p13 = scmp.ne.s32.totalorder %s5734_s26, 0  ;;  %s5765_s17 = scalar_lea.sflag [#allocation13], %s4742_s3 }
 0x1dc   : > { %s4143_s11 = scalar_lea.hbm %s4895_s1, 2048  ;;  %s4148_s20 = scalar_lea.hbm %s5606_s8, 4096 }
 0x1dd   : > { %3464 = dma.hbm_to_vmem [thread:$0]  (!%p5764_p13), %s5115_s10, 16, %s778_s4, %s5765_s17  }
 0x1de   : > { %p4144_p12 = scmp.ne.s32.totalorder %s4895_s1, %s4143_s11  ;;  %p4149_p6 = scmp.lt.u32.totalorder %s4895_s1, %s5606_s8 }
 0x1df   : > { %p4150_p3 = scmp.lt.u32.totalorder %s4148_s20, %s4143_s11  ;;  %p4152_p8 = scmp.lt.u32.totalorder %s4143_s11, %s4895_s1 }
 0x1e0   : > { %p4146_p0 = pnand %p4144_p12, %p5758_p9 }
 0x1e1   : > { %p4151_p5 = por %p4150_p3, %p4149_p6 }
 0x1e2   : > { %p4147_p2 = pneg %p4146_p0 }
 0x1e3   : > { %p4153_p10 = por %p4152_p8, %p4151_p5 }
 0x1e5   : > { %p4154_p7 = pnand %p4153_p10, %p4147_p2 }
 0x1e7   : > { %4157 = shalt.err (!%p4154_p7)
}
 0x1e8   : > { %s4158_s10 = scalar_lea.vmem %s4897_s22, 2048  ;;  %s4411_s4 = smov [#allocation17]  }
 0x1e9   : > { %p4159_p1 = scmp.ne.s32.totalorder %s4897_s22, %s4158_s10  ;;  %s4163_s25 = sshll.u32 %s4411_s4, 4  ;;  %s4164_s25 = int_to_ptr.vmem [resolvable:$false] %s4163_s25 }
 0x1ea   : > { %s4165_s5 = scalar_lea.vmem %s4164_s25, 4096  ;;  %p4166_p12 = scmp.lt.s32.totalorder %s4897_s22, %s4164_s25 }
 0x1eb   : > { %p4161_p4 = pnand %p4159_p1, %p5758_p9  ;;  %p4167_p0 = scmp.lt.s32.totalorder %s4165_s5, %s4158_s10 }
 0x1ed   : > { %p4162_p11 = pneg %p4161_p4  ;;  %p4168_p6 = por %p4167_p0, %p4166_p12 }
 0x1ef   : > { %p4169_p3 = pnand %p4168_p6, %p4162_p11 }
 0x1f1   : > { %4172 = shalt.err (!%p4169_p3)
}
 0x1f2   : > { %s4412_s30 = smov 128   ;;  %s4413_s21 = smov 8  }
 0x1f3   : > { %s5766_s24 = scalar_lea.sflag [#allocation16], %s4742_s3  ;;  %s5767_s13 = sld [smem:[#allocation69_spill]] }
 0x1f4   : > { %3470 = dma.hbm_to_vmem [thread:$0]  (!%p5764_p13), %s4895_s1, 2048, %s4897_s22, %s5766_s24, %s4412_s30, %s4412_s30, %s4413_s21  }
 0x1f5   : > { %s853_s20 = scalar_lea.vmem [#allocation20], %s4754_s9 }
 0x1f6   : > { %s860_s16 = sshll.u32 %s853_s20, 4  ;;  %s861_s16 = int_to_ptr.vmem [resolvable:$true] %s860_s16 }
 0x1f9   : > { %s5164_s19 = scalar_lea.hbm %s5767_s13, %s4802_s14  ;;  %s4178_s22 = scalar_lea.hbm %s5767_s13, 32 }
 0x1fa   : > { %s4173_s6 = scalar_lea.hbm %s5164_s19, 16  ;;  %p4179_p10 = scmp.lt.u32.totalorder %s5164_s19, %s5767_s13 }
 0x1fb   : > { %p4174_p2 = scmp.ne.s32.totalorder %s5164_s19, %s4173_s6  ;;  %p4180_p7 = scmp.lt.u32.totalorder %s4178_s22, %s4173_s6 }
 0x1fc   : > { %p4182_p4 = scmp.lt.u32.totalorder %s4173_s6, %s5164_s19 }
 0x1fd   : > { %p4176_p5 = pnand %p4174_p2, %p5758_p9  ;;  %p4181_p1 = por %p4180_p7, %p4179_p10 }
 0x1ff   : > { %p4177_p8 = pneg %p4176_p5  ;;  %p4183_p11 = por %p4182_p4, %p4181_p1 }
 0x201   : > { %p4184_p12 = pnand %p4183_p11, %p4177_p8 }
 0x203   : > { %4187 = shalt.err (!%p4184_p12)
}
 0x204   : > { %s4188_s5 = scalar_lea.vmem %s861_s16, 16  ;;  %s4414_s30 = smov [#allocation20]  }
 0x205   : > { %p4189_p0 = scmp.ne.s32.totalorder %s861_s16, %s4188_s5  ;;  %s4193_s21 = sshll.u32 %s4414_s30, 4  ;;  %s4194_s21 = int_to_ptr.vmem [resolvable:$false] %s4193_s21 }
 0x206   : > { %s4195_s24 = scalar_lea.vmem %s4194_s21, 32  ;;  %p4196_p2 = scmp.lt.s32.totalorder %s861_s16, %s4194_s21 }
 0x207   : > { %p4191_p6 = pnand %p4189_p0, %p5758_p9  ;;  %p4197_p5 = scmp.lt.s32.totalorder %s4195_s24, %s4188_s5 }
 0x209   : > { %p4192_p3 = pneg %p4191_p6  ;;  %p4198_p13 = por %p4197_p5, %p4196_p2 }
 0x20b   : > { %p4199_p7 = pnand %p4198_p13, %p4192_p3 }
 0x20d   : > { %4202 = shalt.err (!%p4199_p7)
}
 0x20e   : > { %p5768_p10 = scmp.ne.s32.totalorder %s5734_s26, 0  ;;  %s5769_s17 = scalar_lea.sflag [#allocation19], %s4742_s3 }
 0x20f   : > { %s5770_s6 = sld [smem:[#allocation71_spill]]  ;;  %s887_s4 = scalar_lea.vmem [#allocation23], %s4754_s9 }
 0x210   : > { %3476 = dma.hbm_to_vmem [thread:$0]  (!%p5768_p10), %s5164_s19, 16, %s861_s16, %s5769_s17  }
 0x211   : > { %s894_s22 = sshll.u32 %s887_s4, 4  ;;  %s895_s22 = int_to_ptr.vmem [resolvable:$true] %s894_s22 }
 0x215   : > { %s5190_s10 = scalar_lea.hbm %s5770_s6, %s4802_s14  ;;  %s4208_s19 = scalar_lea.hbm %s5770_s6, 32 }
 0x216   : > { %s4203_s1 = scalar_lea.hbm %s5190_s10, 16  ;;  %p4209_p4 = scmp.lt.u32.totalorder %s5190_s10, %s5770_s6 }
 0x217   : > { %p4204_p13 = scmp.ne.s32.totalorder %s5190_s10, %s4203_s1  ;;  %p4210_p11 = scmp.lt.u32.totalorder %s4208_s19, %s4203_s1 }
 0x218   : > { %p4212_p0 = scmp.lt.u32.totalorder %s4203_s1, %s5190_s10 }
 0x219   : > { %p4206_p8 = pnand %p4204_p13, %p5758_p9  ;;  %p4211_p12 = por %p4210_p11, %p4209_p4 }
 0x21b   : > { %p4207_p1 = pneg %p4206_p8  ;;  %p4213_p6 = por %p4212_p0, %p4211_p12 }
 0x21d   : > { %p4214_p3 = pnand %p4213_p6, %p4207_p1 }
 0x21f   : > { %4217 = shalt.err (!%p4214_p3)
}
 0x220   : > { %s4218_s9 = scalar_lea.vmem %s895_s22, 16  ;;  %s4415_s14 = smov [#allocation23]  }
 0x221   : > { %p4219_p2 = scmp.ne.s32.totalorder %s895_s22, %s4218_s9  ;;  %s4223_s21 = sshll.u32 %s4415_s14, 4  ;;  %s4224_s21 = int_to_ptr.vmem [resolvable:$false] %s4223_s21 }
 0x222   : > { %s4225_s24 = scalar_lea.vmem %s4224_s21, 32  ;;  %p4226_p13 = scmp.lt.s32.totalorder %s895_s22, %s4224_s21 }
 0x223   : > { %p4221_p5 = pnand %p4219_p2, %p5758_p9  ;;  %p4227_p8 = scmp.lt.s32.totalorder %s4225_s24, %s4218_s9 }
 0x225   : > { %p4222_p7 = pneg %p4221_p5  ;;  %p4228_p10 = por %p4227_p8, %p4226_p13 }
 0x227   : > { %p4229_p4 = pnand %p4228_p10, %p4222_p7 }
 0x229   : > { %4232 = shalt.err (!%p4229_p4)
}
 0x22a   : > { %p5771_p11 = scmp.ne.s32.totalorder %s5734_s26, 0  ;;  %s5772_s17 = scalar_lea.sflag [#allocation22], %s4742_s3 }
 0x22b   : > { %s5773_s11 = sld [smem:[#allocation50_spill]] }
 0x22c   : > { %3482 = dma.hbm_to_vmem [thread:$0]  (!%p5771_p11), %s5190_s10, 16, %s895_s22, %s5772_s17  }
 0x231   : > { %p5774_p1 = scmp.ne.s32.totalorder %s5773_s11, 0 }
 0x232   : > { %s5775_s23 = sld [smem:[#allocation52_spill]] (!%p5774_p1)  ;;  %s5215_s20 = sand.u32 (!%p5774_p1), 1, %s4367_s2  }
 0x233   : > { %903 = sbr.rel (%p5774_p1) target bundleno = 4707 (0x1263), region = 100  ;;  %s3064_s4 = sshll.u32 (!%p5774_p1), %s5215_s20, 3 }
 0x234   : > { %s906_s1 = scalar_lea.sflag (!%p5774_p1), [#allocation4], %s5215_s20  ;;  %s5219_s25 = scalar_lea.vmem (!%p5774_p1), [#allocation3], %s3064_s4 }
 0x238   : > { %p5776_p9 = scmp.ne.s32.totalorder (!%p5774_p1), %s5775_s23, 0 }
 0x23a   : > { %4306 = dma.done.wait (%p5776_p9), %s906_s1, 128  }
 0x23b   : > { %4308 = vsyncadd (%p5776_p9), %s906_s1, 4294967168  ;;  %s5777_s3 = sld [smem:[#allocation49_spill]]  ;;  %s917_s22 = scalar_lea.vmem [#allocation6], %s5215_s20 }
 0x241   : > { %s5226_s26 = sand.u32 1, %s5777_s3  }
 0x242   : > { %s915_s10 = scalar_lea.sflag [#allocation7], %s5226_s26 }
 0x243   : > { %4310 = dma.done.wait (%p5776_p9), %s915_s10, 16  }
 0x244   : > { %4312 = vsyncadd (%p5776_p9), %s915_s10, 4294967280  ;;  %s5778_s5 = sld [smem:[#allocation42_spill]]  ;;  %s5779_s19 = sld [smem:[#allocation56_spill]] }
 0x24a   : > { %s5235_s16 = sand.u32 1, %s5778_s5   ;;  %p5780_p10 = scmp.ne.s32.totalorder %s5779_s19, 0 }
 0x24b   : > { %s3384_s30 = smul.u32 192, %s5235_s16 }
 0x24d   : > { %s5238_s9 = scalar_lea.vmem [#allocation8], %s3384_s30 }
 0x24e   : > { %4314 = dma.done.wait (%p5780_p10), %s915_s10, 3072  }
 0x24f   : > { %4316 = vsyncadd (%p5780_p10), %s915_s10, 4294964224  ;;  %s3385_s14 = smul.u32 3, %s5235_s16  ;;  %s932_s21 = scalar_lea.sflag [#allocation10], %s5226_s26 }
 0x251   : > { %s5246_s24 = scalar_lea.vmem [#allocation9], %s3385_s14 }
 0x252   : > { %4318 = dma.done.wait (%p5780_p10), %s932_s21, 1072  }
 0x253   : > { %4320 = vsyncadd (%p5780_p10), %s932_s21, 4294966224  ;;  %s3065_s17 = sshll.u32 %s5235_s16, 6  ;;  %s950_s23 = scalar_lea.sflag [#allocation13], %s5226_s26 }
 0x254   : > { %s5253_s11 = scalar_lea.vmem [#allocation11], %s3065_s17  ;;  %s952_s4 = scalar_lea.vmem [#allocation12], %s5235_s16 }
 0x255   : > { %4322 = dma.done.wait (%p5780_p10), %s950_s23, 32  }
 0x256   : > { %4324 = vsyncadd (%p5780_p10), %s950_s23, 4294967264  ;;  %s966_s10 = scalar_lea.sflag [#allocation16], %s5226_s26 }
 0x257   : > { %4326 = dma.done.wait (%p5780_p10), %s966_s10, 2064  }
 0x258   : > { %4328 = vsyncadd (%p5780_p10), %s966_s10, 4294965232  ;;  %s3066_s30 = sshll.u32 %s5235_s16, 7  ;;  %s983_s21 = scalar_lea.sflag [#allocation19], %s5226_s26 }
 0x259   : > { %s5269_s14 = scalar_lea.vmem [#allocation17], %s3066_s30  ;;  %s5272_s17 = scalar_lea.vmem [#allocation18], %s3066_s30 }
 0x25a   : > { %4330 = dma.done.wait (%p5780_p10), %s983_s21, 2064  }
 0x25b   : > { %4332 = vsyncadd (%p5780_p10), %s983_s21, 4294965232  ;;  %s1000_s10 = scalar_lea.sflag [#allocation22], %s5226_s26 }
 0x25c   : > { %4334 = dma.done.wait (%p5780_p10), %s1000_s10, 32  }
 0x25d   : > { %4336 = vsyncadd (%p5780_p10), %s1000_s10, 4294967264  ;;  %p5781_p12 = scmp.eq.s32.totalorder %s5777_s3, 0 }
 0x25f   : > { %4338 = dma.done.wait (%p5781_p12), [#allocation25], 32   ;;  %p5782_p0 = pmov %p5781_p12 }
 0x261   : > { %4340 = vsyncadd (%p5782_p0), [#allocation25], 4294967264  ;;  %p5783_p6 = pmov %p5782_p0 }
 0x262   : > { %p5784_p3 = pmov %p5782_p0 }
 0x263   : > { %4342 = dma.done.wait (%p5783_p6), [#allocation28], 1040  }
 0x264   : > { %4344 = vsyncadd (%p5784_p3), [#allocation28], 4294966256  ;;  %s5785_s26 = sld [smem:[#allocation46_spill]]  ;;  %s5786_s30 = sld [smem:[#allocation67_spill]] }
 0x265   : > { %s1138_s1 = scalar_lea.vmem [#allocation30], %s5215_s20 }
 0x26a   : > { %p1139_p2 = scmp.lt.s32.totalorder %s5785_s26, 1  ;;  %p3073_p5 = scmp.ne.s32.totalorder %s5785_s26, 0 }
 0x26b   : > { %v1148_v0 = vld [vmem:[%s5219_s25] sm:$0xff] (!%p3073_p5) }
 0x26c   : > { %s1140_s19 = scalar_select %p1139_p2, %s5785_s26, 1 }
 0x26d   : > { %1147 = sbr.rel (%p3073_p5) target bundleno = 933 (0x3a5), region = 172  ;;  %1151 = vadd.xlane.f32.xlu0 (!%p3073_p5), %v1148_v0  ;;  %v3074_v9 = vld [vmem:[#allocation24] ss:$0 sm:$0xff] (!%p3073_p5)  ;;  %v3075_v11 = vld [vmem:[#allocation26] ss:$0 sm:$0xff] (!%p3073_p5) }
 0x26e   : > { %s3072_s21 = sshll.u32 %s1140_s19, 1 }
 0x26f   : > { %s5299_s23 = scalar_lea.vmem %s5786_s30, %s3072_s21 }
 0x2fa   : > { %v1152_v1 = vpop.xlane.xlu0 %1151 }
 0x2fb   : > { %v1154_v2 = vmul.f32 0.0078125, %v1152_v1 }
 0x2fd   : > { %v1155_v3 = vsub.f32 %v1148_v0, %v1154_v2 }
 0x2ff   : > { %v1156_v4 = vmul.f32 %v1155_v3, %v1155_v3 }
 0x301   : > { %1157 = vadd.xlane.f32.xlu0 %v1156_v4 }
 0x38e   : > { %v1158_v5 = vpop.xlane.xlu0 %1157 }
 0x38f   : > { %v1159_v6 = vmul.f32 0.0078125, %v1158_v5 }
 0x391   : > { %v1160_v7 = vadd.f32 1e-12, %v1159_v6 }
 0x393   : > { %3603 = vrsqrt.f32 %v1160_v7 }
 0x39d   : > { %v3604_v8 = vpop.eup %3603 }
 0x39e   : > { %v1162_v10 = vmul.f32 %v3604_v8, %v1155_v3 }
 0x3a0   : > { %v1169_v12 = vmul.f32 %v3074_v9, %v1162_v10 }
 0x3a2   : > { %v1176_v13 = vadd.f32 %v3075_v11, %v1169_v12 }
 0x3a4   : > { %1177 = vst [vmem:[#allocation2] sm:$0xff] %v1176_v13 }
 0x3a5 PF: > { %v3605_v14 = vld [vmem:[%s5238_s9 + $0x4] ss:$12 sps:$4 sm:$0xff]   ;;  %v3607_v15 = vld [vmem:[%s5238_s9] ss:$12 sps:$4 sm:$0xff]   ;;  %v4416_v16 = vmov 0   ;;  %v4417_v17 = vmov 0.0   ;;  %v1215_v42 = vlaneseq }
 0x3a6   : > { %1390 = vmatprep.mubr.bf16.mxu0 %v4416_v16  ;;  %3252 = vmatprep.subr.bf16.mxu1 %v4417_v17  ;;  %v3608_v18 = vld [vmem:[%s5238_s9 + $0x1c] ss:$12 sps:$4 sm:$0xff]   ;;  %v3610_v19 = vld [vmem:[%s5238_s9 + $0x18] ss:$12 sps:$4 sm:$0xff]   ;;  %v3611_v20 = vld [vmem:[%s5238_s9 + $0x34] ss:$12 sps:$4 sm:$0xff]  }
 0x3a7   : > { %1358 = vmatprep.subr.bf16.mxu0 %v3605_v14  ;;  %v3613_v21 = vld [vmem:[%s5238_s9 + $0x30] ss:$12 sps:$4 sm:$0xff]   ;;  %v3614_v22 = vld [vmem:[%s5238_s9 + $0x4c] ss:$12 sps:$4 sm:$0xff]   ;;  %v3616_v23 = vld [vmem:[%s5238_s9 + $0x48] ss:$12 sps:$4 sm:$0xff]  }
 0x3a8   : > { %1359 = vmatpush1.bf16.msra.mxu0 %v3607_v15  ;;  %v3629_v24 = vld [vmem:[%s5238_s9 + $0x8] ss:$12 sps:$4 sm:$0xff]   ;;  %v3617_v25 = vld [vmem:[%s5238_s9 + $0x64] ss:$12 sps:$4 sm:$0xff]   ;;  %v3630_v26 = vld [vmem:[%s5238_s9 + $0x20] ss:$12 sps:$4 sm:$0xff]  }
 0x3a9   : > { %1360 = vmatprep.subr.bf16.mxu0 %v3608_v18  ;;  %3253 = vmatpush3.bf16.msra.mxu1 %v3629_v24  ;;  %v3619_v27 = vld [vmem:[%s5238_s9 + $0x60] ss:$12 sps:$4 sm:$0xff]   ;;  %v3620_v28 = vld [vmem:[%s5238_s9 + $0x7c] ss:$12 sps:$4 sm:$0xff]   ;;  %v3622_v29 = vld [vmem:[%s5238_s9 + $0x78] ss:$12 sps:$4 sm:$0xff]  }
 0x3aa   : > { %3254 = vmatprep.subr.bf16.mxu1 %v4417_v17  ;;  %v3631_v30 = vld [vmem:[%s5238_s9 + $0x38] ss:$12 sps:$4 sm:$0xff]   ;;  %v3623_v31 = vld [vmem:[%s5238_s9 + $0x94] ss:$12 sps:$4 sm:$0xff]   ;;  %v3632_v32 = vld [vmem:[%s5238_s9 + $0x50] ss:$12 sps:$4 sm:$0xff]  }
 0x3ab   : > { %v3625_v33 = vld [vmem:[%s5238_s9 + $0x90] ss:$12 sps:$4 sm:$0xff]   ;;  %v3626_v34 = vld [vmem:[%s5238_s9 + $0xac] ss:$12 sps:$4 sm:$0xff]   ;;  %v3633_v35 = vld [vmem:[%s5238_s9 + $0x68] ss:$12 sps:$4 sm:$0xff]  }
 0x3ac   : > { %1361 = vmatpush1.bf16.msra.mxu0 %v3610_v19  ;;  %v3628_v36 = vld [vmem:[%s5238_s9 + $0xa8] ss:$12 sps:$4 sm:$0xff]   ;;  %v3634_v38 = vld [vmem:[%s5238_s9 + $0x80] ss:$12 sps:$4 sm:$0xff]   ;;  %v3635_v40 = vld [vmem:[%s5238_s9 + $0x98] ss:$12 sps:$4 sm:$0xff]  }
 0x3ad   : > { %1362 = vmatprep.subr.bf16.mxu0 %v3611_v20  ;;  %3255 = vmatpush3.bf16.msra.mxu1 %v3630_v26  ;;  %v5330_v37 = vld [vmem:[#allocation2] sm:$0xff]  ;;  %v3636_v41 = vld [vmem:[%s5238_s9 + $0xb0] ss:$12 sps:$4 sm:$0xff]   ;;  %vm4418_vm0 = vmmov 0   ;;  %v5349_v43 = vshrl.u32 %v1215_v42, 7  ;;  %vm1442_vm1 = vcmask 261120  }
 0x3ae   : > { %3256 = vmatprep.subr.bf16.mxu1 %v4417_v17  ;;  %v1180_v39 = vpack.c.bf16 %v5330_v37, %v5330_v37  ;;  %3268 = vmatprep.mubr.msk.bf16.mxu1 %vm4418_vm0, %v4417_v17  ;;  %v1213_v45 = vld [vmem:[%s5246_s24] sm:$0x7]  ;;  %s4419_s25 = smov 96   ;;  %s4420_s3 = smov 64   ;;  %vm1513_vm2 = vcmask 1043456   ;;  %vm1497_vm3 = vcmask 64512  }
 0x3af   : > { %v1221_v44 = vsub.s32 1, %v5349_v43  ;;  %v1217_v46 = vsub.s32 0, %v5349_v43  ;;  %s4421_s9 = smov 32   ;;  %v1225_v58 = vsub.s32 2, %v5349_v43  ;;  %v5376_v4 = vld [vmem:[%s917_s22] ss:$0 sm:$0xff] }
 0x3b0   : > { %1363 = vmatpush1.bf16.msra.mxu0 %v3613_v21  ;;  %vm1909_vm4 = vcmask 523264   ;;  %vm1911_vm5 = vcmask 785408   ;;  %s5787_s22 = scalar_lea.vmem [#allocation14], %s5235_s16  ;;  %s5788_s24 = scalar_lea.vmem [#allocation15], %s5235_s16 }
 0x3b1   : > { %1364 = vmatprep.subr.bf16.mxu0 %v3614_v22  ;;  %3257 = vmatpush3.bf16.msra.mxu1 %v3631_v30  ;;  %v1222_v47 = vrot.slane %v1213_v45, %v1221_v44  ;;  %v1218_v48 = vrot.slane %v1213_v45, %v1217_v46  ;;  %v1226_v59 = vrot.slane %v1213_v45, %v1225_v58  ;;  %s5791_s5 = scalar_lea.vmem [#allocation23], %s5235_s16 }
 0x3b2   : > { %3258 = vmatprep.subr.bf16.mxu1 %v4417_v17 }
 0x3b4   : > { %1365 = vmatpush1.bf16.msra.mxu0 %v3616_v23 }
 0x3b5   : > { %1366 = vmatprep.subr.bf16.mxu0 %v3617_v25  ;;  %3259 = vmatpush3.bf16.msra.mxu1 %v3632_v32 }
 0x3b6   : > { %3260 = vmatprep.subr.bf16.mxu1 %v4417_v17 }
 0x3b8   : > { %1367 = vmatpush1.bf16.msra.mxu0 %v3619_v27 }
 0x3b9   : > { %1368 = vmatprep.subr.bf16.mxu0 %v3620_v28  ;;  %3261 = vmatpush3.bf16.msra.mxu1 %v3633_v35 }
 0x3ba   : > { %3262 = vmatprep.subr.bf16.mxu1 %v4417_v17 }
 0x3bc   : > { %1369 = vmatpush1.bf16.msra.mxu0 %v3622_v29 }
 0x3bd   : > { %1370 = vmatprep.subr.bf16.mxu0 %v3623_v31  ;;  %3263 = vmatpush3.bf16.msra.mxu1 %v3634_v38 }
 0x3be   : > { %3264 = vmatprep.subr.bf16.mxu1 %v4417_v17 }
 0x3c0   : > { %1371 = vmatpush1.bf16.msra.mxu0 %v3625_v33 }
 0x3c1   : > { %1372 = vmatprep.subr.bf16.mxu0 %v3626_v34  ;;  %3265 = vmatpush3.bf16.msra.mxu1 %v3635_v40 }
 0x3c2   : > { %3266 = vmatprep.subr.bf16.mxu1 %v4417_v17 }
 0x3c4   : > { %1373 = vmatpush1.bf16.msra.mxu0 %v3628_v36 }
 0x3c5   : > { %3296 = vmatprep.subr.bf16.mxu0 %v4417_v17  ;;  %3267 = vmatpush3.bf16.msra.mxu1 %v3636_v41 }
 0x3c6   : > { %3272 = vmatprep.subr.bf16.mxu1 %v4417_v17 }
 0x3c7   : > { %1391 = vmatmul.mubr.bf16.vlgmr.msra.gmra.mrb[0].mxu0 %v1180_v39 }
 0x3c8   : > { %3298 = vmatprep.mubr.msk.bf16.mxu0 %vm4418_vm0, %v4417_v17  ;;  %3269 = vmatmul.mubr.bf16.vlgmr.msra.gmra.mrb[0].mxu1 %v1180_v39 }
 0x3c9   : > { %3274 = vmatprep.mubr.msk.bf16.mxu1 %vm4418_vm0, %v4417_v17 }
 0x49a   : > { %v1392_v49 = vpop.f32.mrb[0].mxu0 }
 0x49b   : > { %v1394_v50 = vpop.f32.mrb[1].mxu0  ;;  %v1393_v54 = vadd.f32 %v1392_v49, %v1218_v48  ;;  %v1433_v60 = vpop.f32.mrb[0].mxu1 }
 0x49c   : > { %v1395_v51 = vadd.f32 %v1394_v50, %v1222_v47  ;;  %v1396_v52 = vpop.f32.mrb[2].mxu0  ;;  %v1434_v61 = vadd.f32 %v1433_v60, %v1226_v59  ;;  %v3270_v62 = vpop.f32.mrb[1].mxu1 }
 0x49d   : > { %v1397_v53 = vpop.f32.mrb[3].mxu0  ;;  %v1439_v57 = vpack.c.bf16 %v1393_v54, %v1393_v54  ;;  %v1436_v63 = vpop.f32.mrb[2].mxu1 }
 0x49e   : > { %v1440_v55 = vpack.c.bf16 %v1395_v51, %v1395_v51  ;;  %v5369_v0 = vpack.c.bf16 %v1434_v61, %v1434_v61  ;;  %v3271_v1 = vpop.f32.mrb[3].mxu1 }
 0x4a0   : > { %1561 = vrot.lane.b32.xlu1 %v1440_v55, %s4419_s25  ;;  %v1447_v56 = vsel %vm1442_vm1, %v1440_v55, 0  ;;  %v1515_v2 = vsel %vm1513_vm2, %v5369_v0, 0 }
 0x4a1   : > { %3273 = vmatpush3.bf16.xpose.msra.mxu1 %v1447_v56 }
 0x4a2   : > { %3278 = vmatprep.subr.bf16.mxu1 %v4417_v17 }
 0x4a4   : > { %1558 = vrot.lane.b32.xlu1 %v1439_v57, %s4419_s25 }
 0x4a8   : > { %1672 = vrot.lane.b32.xlu1 %v1439_v57, %s4420_s3  ;;  %3275 = vmatmul.mubr.msk.bf16.vlgmr.msra.gmra.mrb[4].mxu1 %vm1442_vm1, %v1439_v57 }
 0x4a9   : > { %3280 = vmatprep.mubr.msk.bf16.mxu1 %vm4418_vm0, %v4417_v17  ;;  %3279 = vmatpush3.bf16.msra.mxu1 %v1515_v2 }
 0x4aa   : > { %3284 = vmatprep.subr.bf16.mxu1 %v4417_v17 }
 0x4ac   : > { %1786 = vrot.lane.b32.xlu1 %v1440_v55, %s4421_s9 }
 0x4b0   : > { %1784 = vrot.lane.b32.xlu1 %v1439_v57, %s4421_s9 }
 0x512   : > { %v1562_v18 = vpop.permute.xlu1 %1561 }
 0x513   : > { %v1567_v29 = vsel %vm1442_vm1, %v1562_v18, 0 }
 0x516   : > { %v1559_v19 = vpop.permute.xlu1 %1558 }
 0x51a   : > { %v1673_v21 = vpop.permute.xlu1 %1672 }
 0x51e   : > { %v1787_v24 = vpop.permute.xlu1 %1786 }
 0x51f   : > { %v1792_v27 = vsel %vm1442_vm1, %v1787_v24, 0 }
 0x522   : > { %v1785_v30 = vpop.permute.xlu1 %1784 }
 0x57b   : > { %v1483_v3 = vpop.f32.mrb[4].mxu1 }
 0x57c   : > { %v1489_v5 = vmul.f32 0.17677669, %v1483_v3  ;;  %v3276_v6 = vpop.f32.mrb[5].mxu1 }
 0x57d   : > { %v1486_v7 = vpop.f32.mrb[6].mxu1 }
 0x57e   : > { %v3277_v8 = vpop.f32.mrb[7].mxu1  ;;  %v1496_v9 = vadd.f32 %v5376_v4, %v1489_v5 }
 0x580   : > { %v1498_v10 = vsel %vm1497_vm3, %v1496_v9, -inf }
 0x581   : > { %1499 = vmax.xlane.f32.xlu0 %v1498_v10 }
 0x60e   : > { %v1500_v11 = vpop.xlane.xlu0 %1499 }
 0x60f   : > { %v1501_v12 = vsub.f32 %v1496_v9, %v1500_v11 }
 0x611   : > { %v1502_v13 = vmul.f32 1.442695, %v1501_v12 }
 0x613   : > { %3685 = vpow2.f32 %v1502_v13 }
 0x61d   : > { %v3686_v14 = vpop.eup %3685 }
 0x61e   : > { %v1504_v15 = vsel %vm1497_vm3, %v3686_v14, 0.0 }
 0x61f   : > { %1505 = vadd.xlane.f32.xlu0 %v1504_v15 }
 0x635   : > { %1674 = vrot.lane.b32.xlu0 %v1440_v55, %s4420_s3 }
 0x6ac   : > { %v1506_v20 = vpop.xlane.xlu0 %1505 }
 0x6ad   : > { %3687 = vrcp.f32 %v1506_v20 }
 0x6b0   : > { %v1675_v22 = vpop.permute.xlu0 %1674 }
 0x6b1   : > { %v1680_v23 = vsel %vm1442_vm1, %v1675_v22, 0 }
 0x6b2   : > { %3297 = vmatpush3.bf16.xpose.msra.mxu0 %v1680_v23 }
 0x6b3   : > { %3308 = vmatprep.subr.bf16.mxu0 %v4417_v17 }
 0x6b7   : > { %v3688_v25 = vpop.eup %3687 }
 0x6b8   : > { %v1508_v26 = vmul.f32 %v3688_v25, %v3686_v14 }
 0x6b9   : > { %3299 = vmatmul.mubr.msk.bf16.vlgmr.msra.gmra.mrb[4].mxu0 %vm1442_vm1, %v1673_v21 }
 0x6ba   : > { %3309 = vmatpush3.bf16.xpose.msra.mxu0 %v1792_v27  ;;  %v1509_v28 = vpack.c.bf16 %v1508_v26, %v1508_v26  ;;  %3310 = vmatprep.mubr.msk.bf16.mxu0 %vm4418_vm0, %v4417_v17 }
 0x6bb   : > { %3320 = vmatprep.subr.bf16.mxu0 %v4417_v17 }
 0x6bc   : > { %3281 = vmatmul.mubr.msk.bf16.vlgmr.msra.gmra.mrb[8].mxu1 %vm1497_vm3, %v1509_v28 }
 0x6bd   : > { %3285 = vmatpush3.bf16.xpose.msra.mxu1 %v1567_v29  ;;  %3286 = vmatprep.mubr.msk.bf16.mxu1 %vm4418_vm0, %v4417_v17 }
 0x6be   : > { %3290 = vmatprep.subr.bf16.mxu1 %v4417_v17 }
 0x6c1   : > { %3311 = vmatmul.mubr.msk.bf16.vlgmr.msra.gmra.mrb[8].mxu0 %vm1442_vm1, %v1785_v30 }
 0x6c2   : > { %3336 = vmatprep.mubr.msk.bf16.mxu0 %vm4418_vm0, %v4417_v17 }
 0x6c4   : > { %3287 = vmatmul.mubr.msk.bf16.vlgmr.msra.gmra.mrb[12].mxu1 %vm1442_vm1, %v1559_v19 }
 0x6c5   : > { %3292 = vmatprep.mubr.msk.bf16.mxu1 %vm4418_vm0, %v4417_v17 }
 0x78c   : > { %v1716_v31 = vpop.f32.mrb[4].mxu0 }
 0x78d   : > { %v1722_v32 = vmul.f32 0.17677669, %v1716_v31  ;;  %v3300_v33 = vpop.f32.mrb[5].mxu0  ;;  %v3637_v31 = vld [vmem:[%s5253_s11] sm:$0xff]  }
 0x78e   : > { %v1719_v34 = vpop.f32.mrb[6].mxu0  ;;  %3321 = vmatpush3.bf16.msra.mxu0 %v3637_v31  ;;  %v3639_v33 = vld [vmem:[%s5253_s11 + $0x10] sm:$0xff]  }
 0x78f   : > { %v5400_v35 = vpop.f32.mrb[8].mxu1  ;;  %v3301_v36 = vpop.f32.mrb[7].mxu0  ;;  %v1723_v38 = vadd.f32 %v5376_v4, %v1722_v32  ;;  %v3638_v32 = vld [vmem:[%s5253_s11 + $0x8] sm:$0xff]   ;;  %3322 = vmatprep.subr.bf16.mxu0 %v4417_v17  ;;  %v3640_v34 = vld [vmem:[%s5253_s11 + $0x18] sm:$0xff]  }
 0x790   : > { %v3282_v39 = vpop.f32.mrb[9].mxu1  ;;  %v3641_v36 = vld [vmem:[%s5253_s11 + $0x20] sm:$0xff]  }
 0x791   : > { %v1554_v40 = vpop.f32.mrb[10].mxu1  ;;  %v1724_v41 = vsel %vm1497_vm3, %v1723_v38, -inf }
 0x792   : > { %1725 = vmax.xlane.f32.xlu0 %v1724_v41  ;;  %v3283_v42 = vpop.f32.mrb[11].mxu1  ;;  %3323 = vmatpush3.bf16.msra.mxu0 %v3638_v32 }
 0x793   : > { %3324 = vmatprep.subr.bf16.mxu0 %v4417_v17 }
 0x794   : > { %v1828_v45 = vpop.f32.mrb[8].mxu0 }
 0x795   : > { %v3312_v47 = vpop.f32.mrb[9].mxu0  ;;  %v1834_v51 = vmul.f32 0.17677669, %v1828_v45  ;;  %v3644_v45 = vld [vmem:[%s5253_s11 + $0x38] sm:$0xff]  }
 0x796   : > { %v1831_v48 = vpop.f32.mrb[10].mxu0  ;;  %3325 = vmatpush3.bf16.msra.mxu0 %v3639_v33 }
 0x797   : > { %v1603_v49 = vpop.f32.mrb[12].mxu1  ;;  %v3313_v50 = vpop.f32.mrb[11].mxu0  ;;  %v1835_v58 = vadd.f32 %v5376_v4, %v1834_v51  ;;  %3326 = vmatprep.subr.bf16.mxu0 %v4417_v17 }
 0x798   : > { %v1609_v52 = vmul.f32 0.17677669, %v1603_v49  ;;  %v3288_v53 = vpop.f32.mrb[13].mxu1 }
 0x799   : > { %v1606_v54 = vpop.f32.mrb[14].mxu1  ;;  %v1836_v59 = vsel %vm1497_vm3, %v1835_v58, -inf }
 0x79a   : > { %v3289_v55 = vpop.f32.mrb[15].mxu1  ;;  %v1610_v56 = vadd.f32 %v5376_v4, %v1609_v52  ;;  %3327 = vmatpush3.bf16.msra.mxu0 %v3640_v34  ;;  %v3669_v34 = vld [vmem:[%s5272_s17 + $0x40] sm:$0xff]  }
 0x79b   : > { %3328 = vmatprep.subr.bf16.mxu0 %v4417_v17 }
 0x79c   : > { %v1611_v57 = vsel %vm1497_vm3, %v1610_v56, -inf }
 0x79d   : > { %1612 = vmax.xlane.f32.xlu1 %v1611_v57 }
 0x79e   : > { %3329 = vmatpush3.bf16.msra.mxu0 %v3641_v36  ;;  %v3670_v36 = vld [vmem:[%s5272_s17] sm:$0xff]  }
 0x79f   : > { %3330 = vmatprep.subr.bf16.mxu0 %v4417_v17 }
 0x7a1   : > { %1837 = vmax.xlane.f32.xlu1 %v1836_v59 }
 0x81f   : > { %v1726_v60 = vpop.xlane.xlu0 %1725 }
 0x820   : > { %v1727_v61 = vsub.f32 %v1723_v38, %v1726_v60  ;;  %v3643_v38 = vld [vmem:[%s5253_s11 + $0x30] sm:$0xff]  }
 0x822   : > { %v1728_v62 = vmul.f32 1.442695, %v1727_v61  ;;  %v3109_v61 = vld [vmem:[%s952_s4] ss:$0 sm:$0xff]  ;;  %s5790_s4 = scalar_lea.vmem [#allocation21], %s5235_s16 }
 0x824   : > { %3689 = vpow2.f32 %v1728_v62 }
 0x82a   : > { %v1613_v63 = vpop.xlane.xlu1 %1612 }
 0x82b   : > { %v1614_v1 = vsub.f32 %v1610_v56, %v1613_v63 }
 0x82d   : > { %v1615_v7 = vmul.f32 1.442695, %v1614_v1 }
 0x82e   : > { %v3690_v2 = vpop.eup %3689  ;;  %v1838_v3 = vpop.xlane.xlu1 %1837 }
 0x82f   : > { %v1839_v5 = vsub.f32 %v1835_v58, %v1838_v3  ;;  %v1730_v6 = vsel %vm1497_vm3, %v3690_v2, 0.0 }
 0x830   : > { %1731 = vadd.xlane.f32.xlu0 %v1730_v6  ;;  %v3647_v6 = vld [vmem:[%s5269_s14 + $0x4] ss:$8 sps:$4 sm:$0xff]  }
 0x831   : > { %v1840_v8 = vmul.f32 1.442695, %v1839_v5 }
 0x833   : > { %3691 = vpow2.f32 %v1840_v8  ;;  %v3648_v8 = vld [vmem:[%s5269_s14 + $0x10] ss:$8 sps:$4 sm:$0xff]  }
 0x834   : > { %3693 = vpow2.f32 %v1615_v7  ;;  %v3650_v7 = vld [vmem:[%s5269_s14 + $0x14] ss:$8 sps:$4 sm:$0xff]  }
 0x83d   : > { %v3692_v4 = vpop.eup %3691 }
 0x83e   : > { %v1842_v9 = vsel %vm1497_vm3, %v3692_v4, 0.0  ;;  %v3694_v10 = vpop.eup %3693 }
 0x83f   : > { %1843 = vadd.xlane.f32.xlu1 %v1842_v9  ;;  %v1617_v11 = vsel %vm1497_vm3, %v3694_v10, 0.0  ;;  %v3651_v9 = vld [vmem:[%s5269_s14 + $0x20] ss:$8 sps:$4 sm:$0xff]  }
 0x843   : > { %1618 = vadd.xlane.f32.xlu1 %v1617_v11 }
 0x846   : > { %1624 = vrot.lane.b32.xlu0 %v5369_v0, %s4419_s25 }
 0x854   : > { %1736 = vrot.lane.b32.xlu1 %v5369_v0, %s4420_s3 }
 0x858   : > { %1848 = vrot.lane.b32.xlu1 %v5369_v0, %s4421_s9 }
 0x8bd   : > { %v1732_v12 = vpop.xlane.xlu0 %1731 }
 0x8c1   : > { %v1625_v13 = vpop.permute.xlu0 %1624 }
 0x8c2   : > { %v1630_v14 = vsel %vm1513_vm2, %v1625_v13, 0  ;;  %v3656_v13 = vld [vmem:[%s5269_s14 + $0x34] ss:$8 sps:$4 sm:$0xff]  }
 0x8c3   : > { %3291 = vmatpush3.bf16.msra.mxu1 %v1630_v14  ;;  %v3654_v14 = vld [vmem:[%s5269_s14 + $0x30] ss:$8 sps:$4 sm:$0xff]  }
 0x8c4   : > { %3302 = vmatprep.subr.bf16.mxu1 %v4417_v17 }
 0x8cc   : > { %v1844_v15 = vpop.xlane.xlu1 %1843 }
 0x8d0   : > { %v1619_v18 = vpop.xlane.xlu1 %1618 }
 0x8d1   : > { %3695 = vrcp.f32 %v1619_v18  ;;  %v3657_v18 = vld [vmem:[%s5269_s14 + $0x40] ss:$8 sps:$4 sm:$0xff]  }
 0x8d2   : > { %3697 = vrcp.f32 %v1732_v12 }
 0x8d3   : > { %3699 = vrcp.f32 %v1844_v15  ;;  %v3659_v15 = vld [vmem:[%s5269_s14 + $0x44] ss:$8 sps:$4 sm:$0xff]  }
 0x8d4   : > { %v1737_v21 = vpop.permute.xlu1 %1736 }
 0x8d5   : > { %v1742_v24 = vsel %vm1513_vm2, %v1737_v21, 0  ;;  %v3665_v21 = vld [vmem:[%s5269_s14 + $0x64] ss:$8 sps:$4 sm:$0xff]  }
 0x8d8   : > { %v1849_v25 = vpop.permute.xlu1 %1848 }
 0x8d9   : > { %v1854_v28 = vsel %vm1513_vm2, %v1849_v25, 0 }
 0x8db   : > { %v3696_v19 = vpop.eup %3695 }
 0x8dc   : > { %v1621_v20 = vmul.f32 %v3696_v19, %v3694_v10  ;;  %v3698_v23 = vpop.eup %3697  ;;  %v3662_v19 = vld [vmem:[%s5269_s14 + $0x54] ss:$8 sps:$4 sm:$0xff]  }
 0x8dd   : > { %v1734_v0 = vmul.f32 %v3698_v23, %v3690_v2  ;;  %v3700_v27 = vpop.eup %3699  ;;  %v3668_v23 = vld [vmem:[%s5269_s14 + $0x74] ss:$8 sps:$4 sm:$0xff]  }
 0x8de   : > { %v1622_v22 = vpack.c.bf16 %v1621_v20, %v1621_v20  ;;  %v1846_v29 = vmul.f32 %v3700_v27, %v3692_v4  ;;  %v3653_v4 = vld [vmem:[%s5269_s14 + $0x24] ss:$8 sps:$4 sm:$0xff]   ;;  %v3660_v20 = vld [vmem:[%s5269_s14 + $0x50] ss:$8 sps:$4 sm:$0xff]  }
 0x8df   : > { %v1735_v26 = vpack.c.bf16 %v1734_v0, %v1734_v0 }
 0x8e0   : > { %3293 = vmatmul.mubr.msk.bf16.vlgmr.msra.gmra.mrb[16].mxu1 %vm1497_vm3, %v1622_v22  ;;  %v1847_v30 = vpack.c.bf16 %v1846_v29, %v1846_v29  ;;  %v3663_v22 = vld [vmem:[%s5269_s14 + $0x60] ss:$8 sps:$4 sm:$0xff]  }
 0x8e1   : > { %3303 = vmatpush3.bf16.msra.mxu1 %v1742_v24  ;;  %3304 = vmatprep.mubr.msk.bf16.mxu1 %vm4418_vm0, %v4417_v17  ;;  %v3666_v24 = vld [vmem:[%s5269_s14 + $0x70] ss:$8 sps:$4 sm:$0xff]  }
 0x8e2   : > { %3314 = vmatprep.subr.bf16.mxu1 %v4417_v17 }
 0x8e8   : > { %3305 = vmatmul.mubr.msk.bf16.vlgmr.msra.gmra.mrb[20].mxu1 %vm1497_vm3, %v1735_v26 }
 0x8e9   : > { %3315 = vmatpush3.bf16.msra.mxu1 %v1854_v28  ;;  %3316 = vmatprep.mubr.msk.bf16.mxu1 %vm4418_vm0, %v4417_v17  ;;  %v3118_v28 = vld [vmem:[%s5787_s22] ss:$0 sm:$0xff] }
 0x8ea   : > { %2163 = vmatprep.subr.bf16.mxu1 %v3647_v6 }
 0x8f0   : > { %3317 = vmatmul.mubr.msk.bf16.vlgmr.msra.gmra.mrb[24].mxu1 %vm1497_vm3, %v1847_v30  ;;  %v3119_v30 = vld [vmem:[%s5788_s24] ss:$0 sm:$0xff] }
 0x8f1   : > { %2195 = vmatprep.mubr.bf16.mxu1 %v4416_v16  ;;  %v3642_v16 = vld [vmem:[%s5253_s11 + $0x28] sm:$0xff]   ;;  %s5789_s11 = scalar_lea.vmem [#allocation20], %s5235_s16 }
 0x8f2   : > { %3331 = vmatpush3.bf16.msra.mxu0 %v3642_v16  ;;  %v3671_v16 = vld [vmem:[%s5272_s17 + $0x48] sm:$0xff]  }
 0x8f3   : > { %3332 = vmatprep.subr.bf16.mxu0 %v4417_v17 }
 0x8f6   : > { %3333 = vmatpush3.bf16.msra.mxu0 %v3643_v38  ;;  %v3672_v38 = vld [vmem:[%s5272_s17 + $0x8] sm:$0xff]  }
 0x8f7   : > { %3334 = vmatprep.subr.bf16.mxu0 %v4417_v17 }
 0x8fa   : > { %3335 = vmatpush3.bf16.msra.mxu0 %v3644_v45  ;;  %v3677_v45 = vld [vmem:[%s5272_s17 + $0x60] sm:$0xff]  }
 0x8fb   : > { %3212 = vmatprep.subr.bf16.mxu0 %v3669_v34  ;;  %v3154_v34 = vld [vmem:[%s5791_s5] ss:$0 sm:$0xff] }
 0x9b3   : > { %v1666_v39 = vpop.f32.mrb[16].mxu1 }
 0x9b4   : > { %1897 = vrot.lane.b32.xlu0 %v1666_v39, %s4421_s9  ;;  %v3294_v40 = vpop.f32.mrb[17].mxu1  ;;  %v3673_v39 = vld [vmem:[%s5272_s17 + $0x50] sm:$0xff]  }
 0x9b5   : > { %v1669_v41 = vpop.f32.mrb[18].mxu1  ;;  %v3674_v40 = vld [vmem:[%s5272_s17 + $0x10] sm:$0xff]  }
 0x9b6   : > { %v3295_v42 = vpop.f32.mrb[19].mxu1  ;;  %v3675_v41 = vld [vmem:[%s5272_s17 + $0x58] sm:$0xff]  }
 0x9b7   : > { %v3676_v42 = vld [vmem:[%s5272_s17 + $0x18] sm:$0xff]  }
 0x9bb   : > { %v1778_v47 = vpop.f32.mrb[20].mxu1 }
 0x9bc   : > { %1901 = vrot.lane.b32.xlu1 %v1778_v47, %s4420_s3  ;;  %v3306_v48 = vpop.f32.mrb[21].mxu1  ;;  %v3678_v47 = vld [vmem:[%s5272_s17 + $0x20] sm:$0xff]  }
 0x9bd   : > { %v1781_v49 = vpop.f32.mrb[22].mxu1  ;;  %v3679_v48 = vld [vmem:[%s5272_s17 + $0x68] sm:$0xff]  }
 0x9be   : > { %v3307_v50 = vpop.f32.mrb[23].mxu1  ;;  %v3680_v49 = vld [vmem:[%s5272_s17 + $0x28] sm:$0xff]  }
 0x9bf   : > { %v3681_v50 = vld [vmem:[%s5272_s17 + $0x70] sm:$0xff]  }
 0x9c3   : > { %v1890_v51 = vpop.f32.mrb[24].mxu1 }
 0x9c4   : > { %1905 = vrot.lane.b32.xlu0 %v1890_v51, %s4419_s25  ;;  %v3318_v52 = vpop.f32.mrb[25].mxu1  ;;  %v3682_v51 = vld [vmem:[%s5272_s17 + $0x30] sm:$0xff]  }
 0x9c5   : > { %v1893_v53 = vpop.f32.mrb[26].mxu1  ;;  %v3683_v52 = vld [vmem:[%s5272_s17 + $0x78] sm:$0xff]  }
 0x9c6   : > { %v3319_v54 = vpop.f32.mrb[27].mxu1  ;;  %v3684_v53 = vld [vmem:[%s5272_s17 + $0x38] sm:$0xff]  }
 0x9c7   : > { %v2071_v54 = vld [vmem:[%s5299_s23] sm:$0x3] }
 0xa26   : > { %v1898_v55 = vpop.permute.xlu0 %1897 }
 0xa27   : > { %v1908_v17 = vsel %vm1442_vm1, %v5400_v35, %v1898_v55  ;;  %v3645_v35 = vld [vmem:[%s5269_s14] ss:$8 sps:$4 sm:$0xff]   ;;  %v2076_v55 = vrot.slane %v2071_v54, %v1217_v46  ;;  %s5792_s14 = sld [smem:[#allocation46_spill]] }
 0xa28   : > { %2164 = vmatpush1.bf16.msra.mxu1 %v3645_v35 }
 0xa29   : > { %2165 = vmatprep.subr.bf16.mxu1 %v3650_v7 }
 0xa2c   : > { %2166 = vmatpush1.bf16.msra.mxu1 %v3648_v8 }
 0xa2d   : > { %2167 = vmatprep.subr.bf16.mxu1 %v3653_v4  ;;  %p3155_p7 = scmp.ne.s32.totalorder %s5792_s14, 1 }
 0xa2e   : > { %v1902_v56 = vpop.permute.xlu1 %1901  ;;  %vm4423_vm6 = vmmov (!%p3155_p7), 0   ;;  %s5793_s23 = sld [smem:[#allocation75_spill]] (!%p3155_p7)  ;;  %s5795_s26 = sld [smem:[#allocation76_spill]] (!%p3155_p7)  ;;  %vm2645_vm7 = vcmask (!%p3155_p7), 1040384  }
 0xa2f   : > { %v1910_v57 = vsel %vm1909_vm4, %v1908_v17, %v1902_v56  ;;  %v2080_v56 = vrot.slane %v2071_v54, %v1221_v44 }
 0xa30   : > { %2168 = vmatpush1.bf16.msra.mxu1 %v3651_v9 }
 0xa31   : > { %2169 = vmatprep.subr.bf16.mxu1 %v3656_v13 }
 0xa34   : > { %2170 = vmatpush1.bf16.msra.mxu1 %v3654_v14  ;;  %s5794_s30 = smov (!%p3155_p7), %s5793_s23 }
 0xa35   : > { %2171 = vmatprep.subr.bf16.mxu1 %v3659_v15  ;;  %v3136_v15 = vld [vmem:[%s5789_s11] ss:$0 sm:$0xff] }
 0xa36   : > { %v1906_v58 = vpop.permute.xlu0 %1905  ;;  %v3721_v54 = vld [vmem:[%s5794_s30 + $0x20] sm:$0xff] (!%p3155_p7)  }
 0xa37   : > { %v1912_v59 = vsel %vm1911_vm5, %v1910_v57, %v1906_v58 }
 0xa38   : > { %v1913_v60 = vpack.c.bf16 %v1912_v59, %v1912_v59  ;;  %2172 = vmatpush1.bf16.msra.mxu1 %v3657_v18 }
 0xa39   : > { %2173 = vmatprep.subr.bf16.mxu1 %v3662_v19 }
 0xa3a   : > { %3337 = vmatmul.mubr.bf16.vlgmr.msra.gmra.mrb[12].mxu0 %v1913_v60 }
 0xa3b   : > { %3213 = vmatpush3.bf16.msra.mxu0 %v3670_v36 }
 0xa3c   : > { %2174 = vmatpush1.bf16.msra.mxu1 %v3660_v20  ;;  %3214 = vmatprep.subr.bf16.mxu0 %v3671_v16 }
 0xa3d   : > { %2175 = vmatprep.subr.bf16.mxu1 %v3665_v21 }
 0xa3f   : > { %3215 = vmatpush3.bf16.msra.mxu0 %v3672_v38  ;;  %v4422_v38 = vmov (!%p3155_p7), 0.0  }
 0xa40   : > { %2176 = vmatpush1.bf16.msra.mxu1 %v3663_v22  ;;  %3216 = vmatprep.subr.bf16.mxu0 %v3673_v39  ;;  %v3710_v39 = vld [vmem:[#allocation27 + $0x8] sm:$0xff] (!%p3155_p7)  }
 0xa41   : > { %2177 = vmatprep.subr.bf16.mxu1 %v3668_v23 }
 0xa43   : > { %3217 = vmatpush3.bf16.msra.mxu0 %v3674_v40  ;;  %v3711_v40 = vld [vmem:[#allocation27 + $0x10] sm:$0xff] (!%p3155_p7)  }
 0xa44   : > { %2178 = vmatpush1.bf16.msra.mxu1 %v3666_v24  ;;  %3218 = vmatprep.subr.bf16.mxu0 %v3675_v41  ;;  %v3717_v41 = vld [vmem:[%s5793_s23] sm:$0xff] (!%p3155_p7)  }
 0xa45   : > { %3360 = vmatprep.subr.bf16.mxu1 (!%p3155_p7), %v4422_v38 }
 0xa47   : > { %3219 = vmatpush3.bf16.msra.mxu0 %v3676_v42  ;;  %v3712_v42 = vld [vmem:[#allocation27 + $0x18] sm:$0xff] (!%p3155_p7)  }
 0xa48   : > { %3220 = vmatprep.subr.bf16.mxu0 %v3677_v45  ;;  %v3718_v45 = vld [vmem:[%s5794_s30 + $0x8] sm:$0xff] (!%p3155_p7)  }
 0xa4b   : > { %3221 = vmatpush3.bf16.msra.mxu0 %v3678_v47  ;;  %v3713_v47 = vld [vmem:[#allocation27 + $0x20] sm:$0xff] (!%p3155_p7)  }
 0xa4c   : > { %3222 = vmatprep.subr.bf16.mxu0 %v3679_v48  ;;  %v3719_v48 = vld [vmem:[%s5794_s30 + $0x10] sm:$0xff] (!%p3155_p7)  }
 0xa4f   : > { %3223 = vmatpush3.bf16.msra.mxu0 %v3680_v49  ;;  %v3714_v49 = vld [vmem:[#allocation27 + $0x28] sm:$0xff] (!%p3155_p7)  }
 0xa50   : > { %3224 = vmatprep.subr.bf16.mxu0 %v3681_v50  ;;  %v3720_v50 = vld [vmem:[%s5794_s30 + $0x18] sm:$0xff] (!%p3155_p7)  }
 0xa53   : > { %3225 = vmatpush3.bf16.msra.mxu0 %v3682_v51  ;;  %v3715_v51 = vld [vmem:[#allocation27 + $0x30] sm:$0xff] (!%p3155_p7)  }
 0xa54   : > { %3226 = vmatprep.subr.bf16.mxu0 %v3683_v52  ;;  %v3716_v52 = vld [vmem:[#allocation27 + $0x38] sm:$0xff] (!%p3155_p7)  }
 0xa57   : > { %3227 = vmatpush3.bf16.msra.mxu0 %v3684_v53 }
 0xa58   : > { %3340 = vmatprep.subr.bf16.mxu0 (!%p3155_p7), %v4422_v38 }
 0xb0d   : > { %v2019_v62 = vpop.f32.mrb[12].mxu0 }
 0xb0e   : > { %v2020_v63 = vadd.f32 %v3109_v61, %v2019_v62  ;;  %v3338_v1 = vpop.f32.mrb[13].mxu0 }
 0xb0f   : > { %v2022_v2 = vpop.f32.mrb[14].mxu0 }
 0xb10   : > { %v3339_v3 = vpop.f32.mrb[15].mxu0  ;;  %v2025_v5 = vadd.f32 %v2020_v63, %v5330_v37 }
 0xb12   : > { %2028 = vadd.xlane.f32.xlu1 %v2025_v5 }
 0xb9f   : > { %v2029_v37 = vpop.xlane.xlu1 %2028 }
 0xba0   : > { %v2031_v10 = vmul.f32 0.0078125, %v2029_v37 }
 0xba2   : > { %v2032_v11 = vsub.f32 %v2025_v5, %v2031_v10 }
 0xba4   : > { %v2033_v12 = vmul.f32 %v2032_v11, %v2032_v11 }
 0xba6   : > { %2034 = vadd.xlane.f32.xlu0 %v2033_v12 }
 0xc33   : > { %v2035_v0 = vpop.xlane.xlu0 %2034 }
 0xc34   : > { %v2036_v25 = vmul.f32 0.0078125, %v2035_v0 }
 0xc36   : > { %v2037_v26 = vadd.f32 1e-12, %v2036_v25 }
 0xc38   : > { %3701 = vrsqrt.f32 %v2037_v26 }
 0xc42   : > { %v3702_v27 = vpop.eup %3701 }
 0xc43   : > { %v2039_v29 = vmul.f32 %v3702_v27, %v2032_v11 }
 0xc45   : > { %v2046_v31 = vmul.f32 %v3118_v28, %v2039_v29 }
 0xc47   : > { %v5473_v32 = vadd.f32 %v3119_v30, %v2046_v31  ;;  %v3153_v31 = vld [vmem:[%s5790_s4] ss:$0 sm:$0xff] }
 0xc49   : > { %v2054_v33 = vpack.c.bf16 %v5473_v32, %v5473_v32 }
 0xc4b   : > { %2196 = vmatmul.mubr.bf16.vlgmr.msra.gmra.mrb[28].mxu1 %v2054_v33 }
 0xc4c   : > { %3376 = vmatprep.mubr.msk.bf16.mxu1 (!%p3155_p7), %vm4423_vm6, %v4422_v38  ;;  %3361 = vmatpush3.bf16.msra.mxu1 (!%p3155_p7), %v3717_v41 }
 0xc4d   : > { %3362 = vmatprep.subr.bf16.mxu1 (!%p3155_p7), %v4422_v38 }
 0xc50   : > { %3363 = vmatpush3.bf16.msra.mxu1 (!%p3155_p7), %v3718_v45 }
 0xc51   : > { %3364 = vmatprep.subr.bf16.mxu1 (!%p3155_p7), %v4422_v38 }
 0xc54   : > { %3365 = vmatpush3.bf16.msra.mxu1 (!%p3155_p7), %v3719_v48 }
 0xc55   : > { %3366 = vmatprep.subr.bf16.mxu1 (!%p3155_p7), %v4422_v38 }
 0xc58   : > { %3367 = vmatpush3.bf16.msra.mxu1 (!%p3155_p7), %v3720_v50 }
 0xc59   : > { %3368 = vmatprep.subr.bf16.mxu1 (!%p3155_p7), %v4422_v38 }
 0xc5c   : > { %3369 = vmatpush3.bf16.msra.mxu1 (!%p3155_p7), %v3721_v54 }
 0xc5d   : > { %3370 = vmatprep.subr.bf16.mxu1 (!%p3155_p7), %v4422_v38 }
 0xd1e   : > { %v2197_v17 = vpop.f32.mrb[28].mxu1 }
 0xd1f   : > { %v2198_v57 = vadd.f32 %v2197_v17, %v2076_v55  ;;  %v2199_v58 = vpop.f32.mrb[29].mxu1  ;;  %v3722_v55 = vld [vmem:[%s5794_s30 + $0x28] sm:$0xff] (!%p3155_p7)   ;;  %v3724_v17 = vld [vmem:[%s5794_s30 + $0x38] sm:$0xff] (!%p3155_p7)  }
 0xd20   : > { %v2200_v59 = vadd.f32 %v2199_v58, %v2080_v56  ;;  %v2201_v60 = vpop.f32.mrb[30].mxu1  ;;  %3371 = vmatpush3.bf16.msra.mxu1 (!%p3155_p7), %v3722_v55  ;;  %v3723_v56 = vld [vmem:[%s5794_s30 + $0x30] sm:$0xff] (!%p3155_p7)  }
 0xd21   : > { %v2204_v61 = vmul.f32 %v2198_v57, %v2198_v57  ;;  %v2202_v62 = vpop.f32.mrb[31].mxu1  ;;  %3372 = vmatprep.subr.bf16.mxu1 (!%p3155_p7), %v4422_v38 }
 0xd22   : > { %v2205_v63 = vmul.f32 %v2200_v59, %v2200_v59 }
 0xd23   : > { %v2206_v1 = vmul.f32 %v2204_v61, %v2198_v57 }
 0xd24   : > { %v2207_v2 = vmul.f32 %v2205_v63, %v2200_v59  ;;  %3373 = vmatpush3.bf16.msra.mxu1 (!%p3155_p7), %v3723_v56 }
 0xd25   : > { %v2208_v3 = vmul.f32 0.044715, %v2206_v1  ;;  %3374 = vmatprep.subr.bf16.mxu1 (!%p3155_p7), %v4422_v38 }
 0xd26   : > { %v2209_v5 = vmul.f32 0.044715, %v2207_v2  ;;  %v2556_v2 = vld [vmem:[%s5795_s26] sm:$0x1] (!%p3155_p7) }
 0xd27   : > { %v2210_v35 = vadd.f32 %v2208_v3, %v2198_v57 }
 0xd28   : > { %v2211_v6 = vadd.f32 %v2209_v5, %v2200_v59  ;;  %3375 = vmatpush3.bf16.msra.mxu1 (!%p3155_p7), %v3724_v17 }
 0xd29   : > { %v2212_v7 = vmul.f32 0.7978846, %v2210_v35 }
 0xd2a   : > { %v2213_v8 = vmul.f32 0.7978846, %v2211_v6 }
 0xd2b   : > { %3703 = vtanh.f32 %v2212_v7 }
 0xd2c   : > { %3705 = vtanh.f32 %v2213_v8 }
 0xd35   : > { %v3704_v43 = vpop.eup %3703 }
 0xd36   : > { %v3706_v44 = vpop.eup %3705  ;;  %v2216_v46 = vadd.f32 1.0, %v3704_v43 }
 0xd37   : > { %v2217_v4 = vadd.f32 1.0, %v3706_v44 }
 0xd38   : > { %v2218_v9 = vmul.f32 0.5, %v2216_v46 }
 0xd39   : > { %v2219_v37 = vmul.f32 0.5, %v2217_v4 }
 0xd3a   : > { %v2220_v10 = vmul.f32 %v2218_v9, %v2198_v57  ;;  %v2449_v57 = vld [vmem:[#allocation29] sm:$0x1] (!%p3155_p7) }
 0xd3b   : > { %v2221_v11 = vmul.f32 %v2219_v37, %v2200_v59 }
 0xd3c   : > { %v2222_v13 = vpack.c.bf16 %v2220_v10, %v2220_v10 }
 0xd3d   : > { %v2223_v12 = vpack.c.bf16 %v2221_v11, %v2221_v11 }
 0xd3f   : > { %2391 = vmatprep.mubr.bf16.mxu0 %v2223_v12 }
 0xd40   : > { %2392 = vmatmul.mubr.bf16.vlgmr.msra.gmra.mrb[16].mxu0 %v2222_v13 }
 0xd41   : > { %3356 = vmatprep.mubr.msk.bf16.mxu0 (!%p3155_p7), %vm4423_vm6, %v4422_v38 }
 0xe13   : > { %v3228_v14 = vpop.f32.mrb[16].mxu0 }
 0xe14   : > { %v3229_v18 = vpop.f32.mrb[17].mxu0 }
 0xe15   : > { %v3230_v19 = vadd.f32 %v3229_v18, %v3228_v14  ;;  %v3231_v20 = vpop.f32.mrb[18].mxu0 }
 0xe16   : > { %v3232_v21 = vpop.f32.mrb[19].mxu0 }
 0xe17   : > { %v2394_v22 = vadd.f32 %v3230_v19, %v3136_v15 }
 0xe19   : > { %v2399_v23 = vadd.f32 %v2394_v22, %v5473_v32  ;;  %v3709_v32 = vld [vmem:[#allocation27] sm:$0xff] (!%p3155_p7)  }
 0xe1a   : > { %3341 = vmatpush3.bf16.msra.mxu0 (!%p3155_p7), %v3709_v32 }
 0xe1b   : > { %2402 = vadd.xlane.f32.xlu0 %v2399_v23  ;;  %3342 = vmatprep.subr.bf16.mxu0 (!%p3155_p7), %v4422_v38 }
 0xe1e   : > { %3343 = vmatpush3.bf16.msra.mxu0 (!%p3155_p7), %v3710_v39 }
 0xe1f   : > { %3344 = vmatprep.subr.bf16.mxu0 (!%p3155_p7), %v4422_v38 }
 0xe22   : > { %3345 = vmatpush3.bf16.msra.mxu0 (!%p3155_p7), %v3711_v40 }
 0xe23   : > { %3346 = vmatprep.subr.bf16.mxu0 (!%p3155_p7), %v4422_v38 }
 0xe26   : > { %3347 = vmatpush3.bf16.msra.mxu0 (!%p3155_p7), %v3712_v42 }
 0xe27   : > { %3348 = vmatprep.subr.bf16.mxu0 (!%p3155_p7), %v4422_v38 }
 0xe2a   : > { %3349 = vmatpush3.bf16.msra.mxu0 (!%p3155_p7), %v3713_v47 }
 0xe2b   : > { %3350 = vmatprep.subr.bf16.mxu0 (!%p3155_p7), %v4422_v38 }
 0xe2e   : > { %3351 = vmatpush3.bf16.msra.mxu0 (!%p3155_p7), %v3714_v49 }
 0xe2f   : > { %3352 = vmatprep.subr.bf16.mxu0 (!%p3155_p7), %v4422_v38 }
 0xe32   : > { %3353 = vmatpush3.bf16.msra.mxu0 (!%p3155_p7), %v3715_v51 }
 0xe33   : > { %3354 = vmatprep.subr.bf16.mxu0 (!%p3155_p7), %v4422_v38 }
 0xe36   : > { %3355 = vmatpush3.bf16.msra.mxu0 (!%p3155_p7), %v3716_v52 }
 0xea8   : > { %v2403_v24 = vpop.xlane.xlu0 %2402 }
 0xea9   : > { %v2404_v0 = vmul.f32 0.0078125, %v2403_v24 }
 0xeab   : > { %v2405_v25 = vsub.f32 %v2399_v23, %v2404_v0 }
 0xead   : > { %v2406_v26 = vmul.f32 %v2405_v25, %v2405_v25 }
 0xeaf   : > { %2407 = vadd.xlane.f32.xlu1 %v2406_v26 }
 0xf3c   : > { %v2408_v27 = vpop.xlane.xlu1 %2407 }
 0xf3d   : > { %v2409_v28 = vmul.f32 0.0078125, %v2408_v27 }
 0xf3f   : > { %v2410_v29 = vadd.f32 1e-12, %v2409_v28 }
 0xf41   : > { %3707 = vrsqrt.f32 %v2410_v29 }
 0xf4b   : > { %v3708_v30 = vpop.eup %3707 }
 0xf4c   : > { %v2412_v33 = vmul.f32 %v3708_v30, %v2405_v25  ;;  %2431 = sbr.rel (%p3155_p7) target bundleno = 4680 (0x1248), region = 176 }
 0xf4e   : > { %v2419_v36 = vmul.f32 %v3153_v31, %v2412_v33 }
 0xf50   : > { %v2426_v16 = vadd.f32 %v3154_v34, %v2419_v36 }
 0xf52   : > { %2427 = vst [vmem:[#allocation2] sm:$0xff] %v2426_v16  ;;  %v2432_v53 = vpack.c.bf16 (!%p3155_p7), %v2426_v16, %v2426_v16 }
 0xf54   : > { %3357 = vmatmul.mubr.bf16.vlgmr.msra.gmra.mrb[0].mxu0 %v2432_v53 }
0x1027   : > { %v2532_v58 = vpop.f32.mrb[0].mxu0 }
0x1028   : > { %v2533_v59 = vadd.f32 %v2532_v58, %v2449_v57  ;;  %v3358_v60 = vpop.f32.mrb[1].mxu0 }
0x1029   : > { %v2535_v61 = vpop.f32.mrb[2].mxu0 }
0x102a   : > { %3725 = vtanh.f32 %v2533_v59  ;;  %v3359_v62 = vpop.f32.mrb[3].mxu0 }
0x1034   : > { %v3726_v63 = vpop.eup %3725 }
0x1035   : > { %v2539_v1 = vpack.c.bf16 %v3726_v63, %v3726_v63 }
0x1037   : > { %3377 = vmatmul.mubr.bf16.vlgmr.msra.gmra.mrb[0].mxu1 %v2539_v1 }
0x110a   : > { %v2639_v3 = vpop.f32.mrb[0].mxu1 }
0x110b   : > { %v2640_v5 = vadd.f32 %v2639_v3, %v2556_v2  ;;  %v3378_v35 = vpop.f32.mrb[1].mxu1 }
0x110c   : > { %v2642_v6 = vpop.f32.mrb[2].mxu1 }
0x110d   : > { %v3379_v7 = vpop.f32.mrb[3].mxu1  ;;  %v2646_v8 = vsel %vm2645_vm7, %v2640_v5, -inf }
0x110e   : > { %2647 = vmax.xlane.f32.xlu0 %v2646_v8 }
0x119b   : > { %v2648_v43 = vpop.xlane.xlu0 %2647 }
0x119c   : > { %v2649_v44 = vsub.f32 %v2640_v5, %v2648_v43 }
0x119e   : > { %v2650_v46 = vmul.f32 1.442695, %v2649_v44 }
0x11a0   : > { %3727 = vpow2.f32 %v2650_v46 }
0x11aa   : > { %v3728_v4 = vpop.eup %3727 }
0x11ab   : > { %v2652_v9 = vsel %vm2645_vm7, %v3728_v4, 0.0 }
0x11ac   : > { %2653 = vadd.xlane.f32.xlu0 %v2652_v9 }
0x1239   : > { %v2654_v37 = vpop.xlane.xlu0 %2653 }
0x123a   : > { %3729 = vrcp.f32 %v2654_v37 }
0x1244   : > { %v3730_v10 = vpop.eup %3729 }
0x1245   : > { %v2656_v11 = vmul.f32 %v3730_v10, %v3728_v4 }
0x1247   : > { %2657 = vst [vmem:[%s1138_s1] sm:$0x1] %v2656_v11 }
0x1248 PF: > { %s5796_s19 = sld [smem:[#allocation47_spill]]  ;;  %s5797_s21 = sld [smem:[#allocation57_spill]] }
0x1249   : > { %s5798_s9 = sld [smem:[#allocation77_spill]]  ;;  %s2671_s24 = sshll.u32 %s1138_s1, 4  ;;  %s2672_s24 = int_to_ptr.vmem [resolvable:$true] %s2671_s24 }
0x124a   : > { %s2659_s11 = scalar_lea.sflag [#allocation5], %s5215_s20  ;;  %s4233_s4 = scalar_lea.vmem %s2672_s24, 16 }
0x124b   : > { %p4234_p13 = scmp.ne.s32.totalorder %s2672_s24, %s4233_s4  ;;  %s4424_s5 = smov [#allocation30]  }
0x124c   : > { %s4237_s14 = sshll.u32 %s4424_s5, 4  ;;  %s4238_s14 = int_to_ptr.vmem [resolvable:$false] %s4237_s14 }
0x124d   : > { %s4239_s16 = scalar_lea.vmem %s4238_s14, 32  ;;  %p4240_p1 = scmp.lt.s32.totalorder %s2672_s24, %s4238_s14 }
0x124e   : > { %s3172_s10 = sshll.u32 %s5796_s19, 4  ;;  %p5799_p8 = scmp.ne.s32.totalorder %s5797_s21, 0 }
0x124f   : > { %s5539_s22 = scalar_lea.hbm %s5798_s9, %s3172_s10  ;;  %p4241_p9 = scmp.lt.s32.totalorder %s4239_s16, %s4233_s4 }
0x1250   : > { %p4235_p4 = pnand %p4234_p13, %p5799_p8 }
0x1251   : > { %p4242_p10 = por %p4241_p9, %p4240_p1 }
0x1252   : > { %p4236_p11 = pneg %p4235_p4 }
0x1254   : > { %p4243_p12 = pnand %p4242_p10, %p4236_p11 }
0x1256   : > { %4246 = shalt.err (!%p4243_p12)
}
0x1257   : > { %s4247_s20 = scalar_lea.hbm %s5539_s22, 16  ;;  %s4251_s23 = scalar_lea.hbm %s5798_s9, 32 }
0x1258   : > { %p4248_p0 = scmp.ne.s32.totalorder %s5539_s22, %s4247_s20  ;;  %p4252_p2 = scmp.lt.u32.totalorder %s5539_s22, %s5798_s9 }
0x1259   : > { %p4253_p5 = scmp.lt.u32.totalorder %s4251_s23, %s4247_s20  ;;  %p4255_p13 = scmp.lt.u32.totalorder %s4247_s20, %s5539_s22 }
0x125a   : > { %p4249_p6 = pnand %p4248_p0, %p5799_p8 }
0x125b   : > { %p4254_p7 = por %p4253_p5, %p4252_p2 }
0x125c   : > { %p4250_p3 = pneg %p4249_p6 }
0x125d   : > { %p4256_p4 = por %p4255_p13, %p4254_p7 }
0x125f   : > { %p4257_p11 = pnand %p4256_p4, %p4250_p3 }
0x1261   : > { %4260 = shalt.err (!%p4257_p11)
}
0x1262   : > { %3428 = dma.vmem_to_hbm [thread:$0]  (%p5799_p8), %s2672_s24, 16, %s5539_s22, %s2659_s11  }
0x1263 PF: > { %s5800_s10 = sld [smem:[#allocation48_spill]]  ;;  %s5801_s25 = sld [smem:[#allocation44_spill]] }
0x1264   : > { %s5802_s3 = sld [smem:[#allocation58_spill]] }
0x1269   : > { %p3496_p1 = scmp.ge.s32.totalorder %s5800_s10, 2  ;;  %s2683_s4 = sand.u32 1, %s5801_s25  }
0x126a   : > { %p5803_p9 = scmp.ne.s32.totalorder %s5802_s3, 0  ;;  %s2684_s5 = scalar_lea.sflag [#allocation5], %s2683_s4 }
0x126c   : > { %p3484_p10 = pnand %p3496_p1, %p5803_p9 }
0x126e   : > { %4346 = dma.done.wait (!%p3484_p10), %s2684_s5, 16  }
0x126f   : > { %4348 = vsyncadd (!%p3484_p10), %s2684_s5, 4294967280  ;;  %s56_s4 = sadd.s32 1, %s5800_s10   ;;  %s5804_s1 = sld [smem:[#allocation42_spill]] }
0x1270   : > { %p53_p12 = scmp.ge.s32.totalorder %s56_s4, 6   ;;  %s5805_s22 = sld [smem:[#allocation43_spill]] }
0x1271   : > { %s5806_s23 = sld [smem:[#allocation54_spill]]  ;;  %s5807_s21 = sld [smem:[#allocation45_spill]] }
0x1272   : > { %s5808_s25 = sld [smem:[#allocation55_spill]]  ;;  %s5809_s11 = sld [smem:[#allocation51_spill]] }
0x1273   : > { %s5810_s14 = sld [smem:[#allocation53_spill]]  ;;  %s5811_s24 = smov %s4367_s2 }
0x1274   : > { %s5813_s3 = smov %s4383_s27  ;;  %s5814_s26 = smov %s4387_s28 }
0x1275   :  { %55 = sbr.rel (!%p53_p12) target bundleno = 43 (0x2b), region = 316 }
0x1277   : > { %s5812_s2 = smov %s5807_s21 }
0x1278   : > { %s5815_s27 = smov %s5809_s11 }
0x1279   : > { %s5816_s28 = smov %s5810_s14 }
0x127c   :  { %2688 = vsyncpa [#allocation4], 1 }
0x127d   :  { %2690 = vsyncpa [#allocation4 + $0x1], 1 }
0x127e   :  { %2691 = vsyncpa [#allocation7], 1 }
0x127f   :  { %2693 = vsyncpa [#allocation7 + $0x1], 1 }
0x1280   :  { %2694 = vsyncpa [#allocation10], 1 }
0x1281   :  { %2696 = vsyncpa [#allocation10 + $0x1], 1 }
0x1282   :  { %2697 = vsyncpa [#allocation13], 1 }
0x1283   :  { %2699 = vsyncpa [#allocation13 + $0x1], 1 }
0x1284   :  { %2700 = vsyncpa [#allocation16], 1 }
0x1285   :  { %2702 = vsyncpa [#allocation16 + $0x1], 1 }
0x1286   :  { %2703 = vsyncpa [#allocation19], 1 }
0x1287   :  { %2705 = vsyncpa [#allocation19 + $0x1], 1 }
0x1288   :  { %2706 = vsyncpa [#allocation22], 1 }
0x1289   :  { %2708 = vsyncpa [#allocation22 + $0x1], 1 }
0x128a   :  { %2709 = vsyncpa [#allocation25], 1 }
0x128b   :  { %2710 = vsyncpa [#allocation28], 1 }
0x128c   :  { %2711 = vsyncpa [#allocation5], 1 }
0x128d   :  { %2713 = vsyncpa [#allocation5 + $0x1], 1 }

</bundles_post_ra>
